<compile_context>
chip_gen: v6e
topology: v6e:2x2x1
jax: 0.10.0
libtpu: 0.0.40
codegen_flags: <defaults>
</compile_context>

<pallas_src>
import functools

import jax
import jax.numpy as jnp
from jax.experimental import pallas as pl
from jax.experimental.pallas import tpu as pltpu

IDIM = 2
HDIM1 = 2 * IDIM   # 4
HDIM2 = 2 * IDIM   # 4
WEIGHT_VARIANCE = 0.1   # std of normal_ init (SEED / NUM_CORES replaced by PRNGKey)
LN_EPS = 1e-5

# packed-parameter column layout (per pair)
_C_W1 = 0                          # 8 cols : w1[p, h, i]                 -> 2h + i
_C_B1 = _C_W1 + HDIM1 * IDIM       # 4 cols : b1[p, h]
_C_W2 = _C_B1 + HDIM1              # 16 cols: w2[p, j, h] * g1[p, h]      -> 4j + h
_C_B2 = _C_W2 + HDIM2 * HDIM1      # 4 cols : b2[p, j] + sum_h w2[p,j,h]*be1[p,h]
_C_WB = _C_B2 + HDIM2              # 4 cols : 0.5 * wb[p, h] * g2[p, h]
_C_BB = _C_WB + HDIM2              # 1 col  : 0.5 * (bb[p] + sum_h wb[p,h]*be2[p,h])
NCOLS = _C_BB + 1                  # 37

_RB = 8   # pair rows per compute block = one sublane tile -> full VPU occupancy


def _round_up(a, b):
    return -(-a // b) * b


def _actor_kernel(x_ref, w_ref, out_ref, xa_ref, xb_ref):
    # x_ref  : (Z, TB)          batch tile of x^T (zones on sublanes, batch on lanes)
    # w_ref  : (P_pad, NCOLS)   packed per-pair params (resident, DMA'd once)
    # out_ref: (P_pad, TB)      sigmoid outputs, pair-major, lane-dense
    # xa_ref, xb_ref: (P_pad, C) VMEM scratch holding the pair-expanded inputs
    Z, TB = x_ref.shape
    P_pad = out_ref.shape[0]
    C = xa_ref.shape[1]
    n_chunks = TB // C
    n_rb = P_pad // _RB
    P = Z * Z

    # Padded pair rows (P..P_pad): zero once so the chain stays finite there
    # (their outputs are sliced off in the wrapper).
    if P_pad > P:
        pad = P_pad - P
        zeros = jnp.zeros((pad, C), jnp.float32)
        xa_ref[pl.ds(P, pad), :] = zeros
        xb_ref[pl.ds(P, pad), :] = zeros

    def row_block(r, off):
        # One (8, C) block of pairs: fully occupied sublanes for any Z.
        start = r * _RB
        if not isinstance(start, int):
            start = pl.multiple_of(start, _RB)
        rows = pl.ds(start, _RB)
        xa = xa_ref[rows, :]                 # (8, C) first-zone inputs
        xb = xb_ref[rows, :]                 # (8, C) second-zone inputs
        w = w_ref[rows, :]                   # (8, NCOLS) packed params (1 vreg)

        def col(c):                          # (8, 1) per-pair scalar column
            return w[:, c:c + 1]

        # ---- linear1 + tanh --------------------------------------------------
        h1 = [jnp.tanh(xa * col(_C_W1 + 2 * h)
                       + xb * col(_C_W1 + 2 * h + 1)
                       + col(_C_B1 + h))
              for h in range(HDIM1)]

        # ---- LayerNorm 1 (affine folded into linear2 weights in pack_params) --
        mean1 = (h1[0] + h1[1] + h1[2] + h1[3]) * 0.25
        d1 = [t - mean1 for t in h1]
        var1 = (d1[0] * d1[0] + d1[1] * d1[1] + d1[2] * d1[2] + d1[3] * d1[3]) * 0.25
        inv1 = jax.lax.rsqrt(var1 + LN_EPS)
        n1 = [t * inv1 for t in d1]

        # ---- linear2 + tanh (weights pre-multiplied by g1, bias absorbs be1) --
        h2 = []
        for o in range(HDIM2):
            acc = (n1[0] * col(_C_W2 + 4 * o)
                   + n1[1] * col(_C_W2 + 4 * o + 1)
                   + n1[2] * col(_C_W2 + 4 * o + 2)
                   + n1[3] * col(_C_W2 + 4 * o + 3)
                   + col(_C_B2 + o))
            h2.append(jnp.tanh(acc))

        # ---- LayerNorm 2 (affine folded into beta weights in pack_params) -----
        mean2 = (h2[0] + h2[1] + h2[2] + h2[3]) * 0.25
        d2 = [t - mean2 for t in h2]
        var2 = (d2[0] * d2[0] + d2[1] * d2[1] + d2[2] * d2[2] + d2[3] * d2[3]) * 0.25
        inv2 = jax.lax.rsqrt(var2 + LN_EPS)
        n2 = [t * inv2 for t in d2]

        # ---- beta (4 -> 1) + sigmoid ------------------------------------------
        # sigmoid(t) = 0.5*tanh(t/2)+0.5; the /2 is pre-folded into wbg/bbf.
        u = (n2[0] * col(_C_WB + 0)
             + n2[1] * col(_C_WB + 1)
             + n2[2] * col(_C_WB + 2)
             + n2[3] * col(_C_WB + 3)
             + col(_C_BB))
        out_ref[rows, pl.ds(off, C)] = 0.5 * jnp.tanh(u) + 0.5

    def chunk_body(j):
        off = j * C
        if not isinstance(off, int):
            off = pl.multiple_of(off, C)
        chunk = x_ref[:, pl.ds(off, C)]                       # (Z, C)
        # Expand to pair ordering p = z*Z + zp: xa[p] = x[z], xb[p] = x[zp].
        for z in range(Z):
            xa_ref[pl.ds(z * Z, Z), :] = jnp.broadcast_to(chunk[z:z + 1, :], (Z, C))
            xb_ref[pl.ds(z * Z, Z), :] = chunk
        # Chain over 8-row pair blocks; unroll when small (LLO visibility),
        # roll when large (bounded live ranges / code size).
        if n_rb <= 16:
            for r in range(n_rb):
                row_block(r, off)
        else:
            pl.loop(0, n_rb)(lambda r: row_block(r, off))

    if n_chunks == 1:
        chunk_body(0)
    else:
        pl.loop(0, n_chunks)(chunk_body)


def init_params(key, total_zones):
    P = total_zones * total_zones
    ks = jax.random.split(key, 6)
    params = {
        # per-pair nn.Linear weights: weight.normal_(0, WEIGHT_VARIANCE)
        "w1": jax.random.normal(ks[0], (P, HDIM1, IDIM), jnp.float32) * WEIGHT_VARIANCE,
        "b1": jax.random.normal(ks[1], (P, HDIM1), jnp.float32) * WEIGHT_VARIANCE,
        "w2": jax.random.normal(ks[2], (P, HDIM2, HDIM1), jnp.float32) * WEIGHT_VARIANCE,
        "b2": jax.random.normal(ks[3], (P, HDIM2), jnp.float32) * WEIGHT_VARIANCE,
        "wb": jax.random.normal(ks[4], (P, 1, HDIM2), jnp.float32) * WEIGHT_VARIANCE,
        "bb": jax.random.normal(ks[5], (P, 1), jnp.float32) * WEIGHT_VARIANCE,
        # LayerNorm defaults: weight = 1, bias = 0
        "g1": jnp.ones((P, HDIM1), jnp.float32),
        "be1": jnp.zeros((P, HDIM1), jnp.float32),
        "g2": jnp.ones((P, HDIM2), jnp.float32),
        "be2": jnp.zeros((P, HDIM2), jnp.float32),
    }
    return params


def pack_params(params, total_zones):
    """Pack the 10 per-pair parameter arrays into one (P, NCOLS) f32 tensor.

    Exact algebraic folds:
      * LayerNorm affine into the following linear:
          sum_h w[j,h]*(n[h]*g[h] + be[h]) + b[j]
            = sum_h (w[j,h]*g[h])*n[h] + (b[j] + sum_h w[j,h]*be[h])
      * sigmoid(t) = 0.5*tanh(t/2) + 0.5: the /2 is folded into wbg/bbf.
    """
    Z = total_zones
    P = Z * Z
    f32 = jnp.float32
    w1 = params["w1"].astype(f32)            # (P, H1, 2)
    b1 = params["b1"].astype(f32)            # (P, H1)
    g1 = params["g1"].astype(f32)
    be1 = params["be1"].astype(f32)
    w2 = params["w2"].astype(f32)            # (P, H2, H1)
    b2 = params["b2"].astype(f32)            # (P, H2)
    g2 = params["g2"].astype(f32)
    be2 = params["be2"].astype(f32)
    wb = params["wb"].astype(f32)[:, 0, :]   # (P, H2)
    bb = params["bb"].astype(f32)[:, 0]      # (P,)

    w2g = w2 * g1[:, None, :]                              # fold LN1 gain
    b2f = b2 + jnp.sum(w2 * be1[:, None, :], axis=-1)      # fold LN1 shift
    wbg = 0.5 * wb * g2                                    # fold LN2 gain + sigmoid /2
    bbf = 0.5 * (bb + jnp.sum(wb * be2, axis=-1))          # fold LN2 shift + sigmoid /2

    packed = jnp.concatenate(
        [
            w1.reshape(P, HDIM1 * IDIM),      # cols  0..7
            b1,                               # cols  8..11
            w2g.reshape(P, HDIM2 * HDIM1),    # cols 12..27
            b2f,                              # cols 28..31
            wbg,                              # cols 32..35
            bbf[:, None],                     # col  36
        ],
        axis=1,
    )                                         # (P, NCOLS)
    return packed


def _choose_tiles(dtPt, Z, P_pad):
    """Pick (batch tile TB, in-kernel lane chunk C)."""
    C = 128 if dtPt <= 256 else 256
    # Keep the double-buffered (P_pad, TB) out block + (Z, TB) x block <= ~12 MiB
    # (safe against v7x's 64 MiB per-TC VMEM with plenty of headroom).
    tb_cap = (12 * 2**20) // (8 * (P_pad + Z))
    tb_cap = max(C, (tb_cap // C) * C)
    tb_cap = min(tb_cap, 2048)
    # >= 2 batch tiles whenever there is enough data: both v7x TensorCores get work.
    tb_half = max(C, _round_up(-(-dtPt // 2), C))
    return min(tb_cap, tb_half), C


@functools.partial(jax.jit, static_argnums=(2,), static_argnames=("pair_major_output",))
def actor_forward(x, packed_w, total_zones, *, pair_major_output=False):
    """x: (dtPt, totalZONES) -> (dtPt, totalZONES, totalZONES).

    With pair_major_output=True returns the kernel-native (Z*Z, dtPt) layout
    (lane-dense), skipping the final full-array relayout pass.
    """
    Z = total_zones
    P = Z * Z
    P_pad = _round_up(P, _RB)
    x = x.astype(jnp.float32)
    dtPt = x.shape[0]

    TB, C = _choose_tiles(dtPt, Z, P_pad)
    dtPt_pad = _round_up(dtPt, TB)
    nbt = dtPt_pad // TB

    xt = x.T                                           # (Z, dtPt): zones on sublanes
    if dtPt_pad != dtPt:
        xt = jnp.pad(xt, ((0, 0), (0, dtPt_pad - dtPt)))
    pw = packed_w.astype(jnp.float32).reshape(P, NCOLS)
    if P_pad != P:
        pw = jnp.pad(pw, ((0, P_pad - P), (0, 0)))     # zero params -> finite pad rows

    # Actual working set (double-buffered blocks + resident params + scratch) + slack.
    needed = (8 * TB * (P_pad + Z)            # 2 x f32 (x block + out block)
              + 8 * P_pad * NCOLS             # packed params (2 buffers worst case)
              + 8 * P_pad * C)                # xa/xb scratch
    vmem_limit = int(min(max(needed + (4 << 20), 8 << 20), 32 << 20))

    out = pl.pallas_call(
        _actor_kernel,
        out_shape=jax.ShapeDtypeStruct((P_pad, dtPt_pad), jnp.float32),
        grid=(nbt,),                                    # batch tiles only (parallel)
        in_specs=[
            pl.BlockSpec((Z, TB), lambda i: (0, i)),            # x tile
            pl.BlockSpec((P_pad, NCOLS), lambda i: (0, 0)),     # params, resident
        ],
        out_specs=pl.BlockSpec((P_pad, TB), lambda i: (0, i)),
        scratch_shapes=[
            pltpu.VMEM((P_pad, C), jnp.float32),                # pair-expanded xa
            pltpu.VMEM((P_pad, C), jnp.float32),                # pair-expanded xb
        ],
        compiler_params=pltpu.CompilerParams(
            dimension_semantics=("parallel",),
            vmem_limit_bytes=vmem_limit,
        ),
        cost_estimate=pl.CostEstimate(
            flops=105 * P_pad * dtPt_pad,
            transcendentals=11 * P_pad * dtPt_pad,   # 9 tanh + 2 rsqrt per output
            bytes_accessed=4 * (Z * dtPt_pad + P_pad * NCOLS + P_pad * dtPt_pad),
        ),
    )(xt, pw)

    out = out[:P, :dtPt]                               # (Z*Z, dtPt), lane-dense
    if pair_major_output:
        return out
    # TODO(synk): consumers able to take the (Z*Z, dtPt) layout should pass
    # pair_major_output=True and skip this full-array relayout pass.
    return out.T.reshape(dtPt, Z, Z)


def ref_forward(x, params, total_zones):
    """Pure-JAX reference matching the PyTorch loop structure."""
    Z = total_zones
    x = x.astype(jnp.float32)
    outs = []
    for z in range(Z):
        for zp in range(Z):
            p = z * Z + zp
            xi = jnp.stack([x[:, z], x[:, zp]], axis=1)             # (dtPt, 2)
            h = jnp.tanh(xi @ params["w1"][p].T + params["b1"][p])
            m = h.mean(-1, keepdims=True)
            v = ((h - m) ** 2).mean(-1, keepdims=True)
            h = (h - m) / jnp.sqrt(v + LN_EPS) * params["g1"][p] + params["be1"][p]
            h = jnp.tanh(h @ params["w2"][p].T + params["b2"][p])
            m = h.mean(-1, keepdims=True)
            v = ((h - m) ** 2).mean(-1, keepdims=True)
            h = (h - m) / jnp.sqrt(v + LN_EPS) * params["g2"][p] + params["be2"][p]
            logit = h @ params["wb"][p].T + params["bb"][p]
            outs.append(jax.nn.sigmoid(logit)[:, 0])
    return jnp.stack(outs, axis=1).reshape(x.shape[0], Z, Z)


if __name__ == "__main__":
    key = jax.random.PRNGKey(0)

    # --- small smoke test (Z=3: padded pair rows path) ------------------------
    Z, dtPt = 3, 8
    k_param, k_x, key = jax.random.split(key, 3)
    params = init_params(k_param, Z)
    x = jax.random.normal(k_x, (dtPt, Z), jnp.float32)
    out = jax.block_until_ready(actor_forward(x, pack_params(params, Z), Z))
    ref = ref_forward(x, params, Z)
    assert out.shape == (dtPt, Z, Z)
    assert jnp.allclose(out, ref, atol=1e-5, rtol=1e-5)

    # --- padded batch + 2 grid tiles ------------------------------------------
    Z2, dtPt2 = 5, 200
    k_param2, k_x2, key = jax.random.split(key, 3)
    params2 = init_params(k_param2, Z2)
    x2 = jax.random.normal(k_x2, (dtPt2, Z2), jnp.float32)
    out2 = jax.block_until_ready(actor_forward(x2, pack_params(params2, Z2), Z2))
    ref2 = ref_forward(x2, params2, Z2)
    assert out2.shape == (dtPt2, Z2, Z2)
    assert jnp.allclose(out2, ref2, atol=1e-5, rtol=1e-5)

    # --- larger batch: exercises the rolled in-kernel lane-chunk loop ---------
    Z3, dtPt3 = 4, 1000
    k_param3, k_x3 = jax.random.split(key)
    params3 = init_params(k_param3, Z3)
    x3 = jax.random.normal(k_x3, (dtPt3, Z3), jnp.float32)
    out3 = jax.block_until_ready(actor_forward(x3, pack_params(params3, Z3), Z3))
    ref3 = ref_forward(x3, params3, Z3)
    assert out3.shape == (dtPt3, Z3, Z3)
    assert jnp.allclose(out3, ref3, atol=1e-5, rtol=1e-5)

    print("KERNEL_OK")
</pallas_src>

<mosaic_0001>
module attributes {stable_mosaic.version = 11 : i64} {
  func.func @_actor_kernel(%arg0: i32, %arg1: memref<3x128xf32, #tpu.memory_space<vmem>>, %arg2: memref<16x37xf32, #tpu.memory_space<vmem>>, %arg3: memref<16x128xf32, #tpu.memory_space<vmem>>, %arg4: memref<16x128xf32, #tpu.memory_space<vmem>>, %arg5: memref<16x128xf32, #tpu.memory_space<vmem>>) attributes {dimension_semantics = [#tpu.dimension_semantics<parallel>], iteration_bounds = array<i64: 1>, scalar_prefetch = 0 : i64, scratch_operands = 2 : i64, tpu.core_type = #tpu.core_type<tc>, window_params = [{transform_indices = @transform_0, window_bounds = array<i64: 3, 128>}, {pipeline_mode = #tpu.pipeline_mode<synchronous>, transform_indices = @transform_1, window_bounds = array<i64: 16, 37>}, {transform_indices = @transform_2, window_bounds = array<i64: 16, 128>}]} {
    %cst = arith.constant 0.000000e+00 : f32
    %0 = vector.broadcast %cst : f32 to vector<7x128xf32>
    %c9 = arith.constant 9 : index
    %c0 = arith.constant 0 : index
    %1 = vector.load %arg4[%c9, %c0] : memref<16x128xf32, #tpu.memory_space<vmem>>, vector<7x128xf32>
    tpu.vector_store %arg4[%c9, %c0], %0 {strides = array<i32>} : memref<16x128xf32, #tpu.memory_space<vmem>>, vector<7x128xf32>,
    %c9_0 = arith.constant 9 : index
    %c0_1 = arith.constant 0 : index
    %2 = vector.load %arg5[%c9_0, %c0_1] : memref<16x128xf32, #tpu.memory_space<vmem>>, vector<7x128xf32>
    tpu.vector_store %arg5[%c9_0, %c0_1], %0 {strides = array<i32>} : memref<16x128xf32, #tpu.memory_space<vmem>>, vector<7x128xf32>,
    %c0_2 = arith.constant 0 : index
    %c0_3 = arith.constant 0 : index
    %3 = vector.load %arg1[%c0_2, %c0_3] : memref<3x128xf32, #tpu.memory_space<vmem>>, vector<3x128xf32>
    %4 = vector.extract_strided_slice %3 {offsets = [0, 0], sizes = [1, 128], strides = [1, 1]} : vector<3x128xf32> to vector<1x128xf32>
    %5 = vector.shape_cast %4 : vector<1x128xf32> to vector<1x128xf32>
    %6 = vector.broadcast %5 : vector<1x128xf32> to vector<3x128xf32>
    %c0_4 = arith.constant 0 : index
    %c0_5 = arith.constant 0 : index
    %7 = vector.load %arg4[%c0_4, %c0_5] : memref<16x128xf32, #tpu.memory_space<vmem>>, vector<3x128xf32>
    tpu.vector_store %arg4[%c0_4, %c0_5], %6 {strides = array<i32>} : memref<16x128xf32, #tpu.memory_space<vmem>>, vector<3x128xf32>,
    %c0_6 = arith.constant 0 : index
    %c0_7 = arith.constant 0 : index
    %8 = vector.load %arg5[%c0_6, %c0_7] : memref<16x128xf32, #tpu.memory_space<vmem>>, vector<3x128xf32>
    tpu.vector_store %arg5[%c0_6, %c0_7], %3 {strides = array<i32>} : memref<16x128xf32, #tpu.memory_space<vmem>>, vector<3x128xf32>,
    %9 = vector.extract_strided_slice %3 {offsets = [1, 0], sizes = [1, 128], strides = [1, 1]} : vector<3x128xf32> to vector<1x128xf32>
    %10 = vector.shape_cast %9 : vector<1x128xf32> to vector<1x128xf32>
    %11 = vector.broadcast %10 : vector<1x128xf32> to vector<3x128xf32>
    %c3 = arith.constant 3 : index
    %c0_8 = arith.constant 0 : index
    %12 = vector.load %arg4[%c3, %c0_8] : memref<16x128xf32, #tpu.memory_space<vmem>>, vector<3x128xf32>
    tpu.vector_store %arg4[%c3, %c0_8], %11 {strides = array<i32>} : memref<16x128xf32, #tpu.memory_space<vmem>>, vector<3x128xf32>,
    %c3_9 = arith.constant 3 : index
    %c0_10 = arith.constant 0 : index
    %13 = vector.load %arg5[%c3_9, %c0_10] : memref<16x128xf32, #tpu.memory_space<vmem>>, vector<3x128xf32>
    tpu.vector_store %arg5[%c3_9, %c0_10], %3 {strides = array<i32>} : memref<16x128xf32, #tpu.memory_space<vmem>>, vector<3x128xf32>,
    %14 = vector.extract_strided_slice %3 {offsets = [2, 0], sizes = [1, 128], strides = [1, 1]} : vector<3x128xf32> to vector<1x128xf32>
    %15 = vector.shape_cast %14 : vector<1x128xf32> to vector<1x128xf32>
    %16 = vector.broadcast %15 : vector<1x128xf32> to vector<3x128xf32>
    %c6 = arith.constant 6 : index
    %c0_11 = arith.constant 0 : index
    %17 = vector.load %arg4[%c6, %c0_11] : memref<16x128xf32, #tpu.memory_space<vmem>>, vector<3x128xf32>
    tpu.vector_store %arg4[%c6, %c0_11], %16 {strides = array<i32>} : memref<16x128xf32, #tpu.memory_space<vmem>>, vector<3x128xf32>,
    %c6_12 = arith.constant 6 : index
    %c0_13 = arith.constant 0 : index
    %18 = vector.load %arg5[%c6_12, %c0_13] : memref<16x128xf32, #tpu.memory_space<vmem>>, vector<3x128xf32>
    tpu.vector_store %arg5[%c6_12, %c0_13], %3 {strides = array<i32>} : memref<16x128xf32, #tpu.memory_space<vmem>>, vector<3x128xf32>,
    %c0_14 = arith.constant 0 : index
    %c0_15 = arith.constant 0 : index
    %19 = vector.load %arg4[%c0_14, %c0_15] : memref<16x128xf32, #tpu.memory_space<vmem>>, vector<8x128xf32>
    %c0_16 = arith.constant 0 : index
    %c0_17 = arith.constant 0 : index
    %20 = vector.load %arg5[%c0_16, %c0_17] : memref<16x128xf32, #tpu.memory_space<vmem>>, vector<8x128xf32>
    %c0_18 = arith.constant 0 : index
    %c0_19 = arith.constant 0 : index
    %21 = vector.load %arg2[%c0_18, %c0_19] : memref<16x37xf32, #tpu.memory_space<vmem>>, vector<8x37xf32>
    %22 = vector.extract_strided_slice %21 {offsets = [0, 0], sizes = [8, 1], strides = [1, 1]} : vector<8x37xf32> to vector<8x1xf32>
    %23 = vector.broadcast %22 : vector<8x1xf32> to vector<8x128xf32>
    %24 = arith.mulf %19, %23 : vector<8x128xf32>
    %25 = vector.extract_strided_slice %21 {offsets = [0, 1], sizes = [8, 1], strides = [1, 1]} : vector<8x37xf32> to vector<8x1xf32>
    %26 = vector.broadcast %25 : vector<8x1xf32> to vector<8x128xf32>
    %27 = arith.mulf %20, %26 : vector<8x128xf32>
    %28 = arith.addf %24, %27 : vector<8x128xf32>
    %29 = vector.extract_strided_slice %21 {offsets = [0, 8], sizes = [8, 1], strides = [1, 1]} : vector<8x37xf32> to vector<8x1xf32>
    %30 = vector.broadcast %29 : vector<8x1xf32> to vector<8x128xf32>
    %31 = arith.addf %28, %30 : vector<8x128xf32>
    %32 = math.tanh %31 : vector<8x128xf32>
    %33 = vector.extract_strided_slice %21 {offsets = [0, 2], sizes = [8, 1], strides = [1, 1]} : vector<8x37xf32> to vector<8x1xf32>
    %34 = vector.broadcast %33 : vector<8x1xf32> to vector<8x128xf32>
    %35 = arith.mulf %19, %34 : vector<8x128xf32>
    %36 = vector.extract_strided_slice %21 {offsets = [0, 3], sizes = [8, 1], strides = [1, 1]} : vector<8x37xf32> to vector<8x1xf32>
    %37 = vector.broadcast %36 : vector<8x1xf32> to vector<8x128xf32>
    %38 = arith.mulf %20, %37 : vector<8x128xf32>
    %39 = arith.addf %35, %38 : vector<8x128xf32>
    %40 = vector.extract_strided_slice %21 {offsets = [0, 9], sizes = [8, 1], strides = [1, 1]} : vector<8x37xf32> to vector<8x1xf32>
    %41 = vector.broadcast %40 : vector<8x1xf32> to vector<8x128xf32>
    %42 = arith.addf %39, %41 : vector<8x128xf32>
    %43 = math.tanh %42 : vector<8x128xf32>
    %44 = vector.extract_strided_slice %21 {offsets = [0, 4], sizes = [8, 1], strides = [1, 1]} : vector<8x37xf32> to vector<8x1xf32>
    %45 = vector.broadcast %44 : vector<8x1xf32> to vector<8x128xf32>
    %46 = arith.mulf %19, %45 : vector<8x128xf32>
    %47 = vector.extract_strided_slice %21 {offsets = [0, 5], sizes = [8, 1], strides = [1, 1]} : vector<8x37xf32> to vector<8x1xf32>
    %48 = vector.broadcast %47 : vector<8x1xf32> to vector<8x128xf32>
    %49 = arith.mulf %20, %48 : vector<8x128xf32>
    %50 = arith.addf %46, %49 : vector<8x128xf32>
    %51 = vector.extract_strided_slice %21 {offsets = [0, 10], sizes = [8, 1], strides = [1, 1]} : vector<8x37xf32> to vector<8x1xf32>
    %52 = vector.broadcast %51 : vector<8x1xf32> to vector<8x128xf32>
    %53 = arith.addf %50, %52 : vector<8x128xf32>
    %54 = math.tanh %53 : vector<8x128xf32>
    %55 = vector.extract_strided_slice %21 {offsets = [0, 6], sizes = [8, 1], strides = [1, 1]} : vector<8x37xf32> to vector<8x1xf32>
    %56 = vector.broadcast %55 : vector<8x1xf32> to vector<8x128xf32>
    %57 = arith.mulf %19, %56 : vector<8x128xf32>
    %58 = vector.extract_strided_slice %21 {offsets = [0, 7], sizes = [8, 1], strides = [1, 1]} : vector<8x37xf32> to vector<8x1xf32>
    %59 = vector.broadcast %58 : vector<8x1xf32> to vector<8x128xf32>
    %60 = arith.mulf %20, %59 : vector<8x128xf32>
    %61 = arith.addf %57, %60 : vector<8x128xf32>
    %62 = vector.extract_strided_slice %21 {offsets = [0, 11], sizes = [8, 1], strides = [1, 1]} : vector<8x37xf32> to vector<8x1xf32>
    %63 = vector.broadcast %62 : vector<8x1xf32> to vector<8x128xf32>
    %64 = arith.addf %61, %63 : vector<8x128xf32>
    %65 = math.tanh %64 : vector<8x128xf32>
    %66 = arith.addf %32, %43 : vector<8x128xf32>
    %67 = arith.addf %66, %54 : vector<8x128xf32>
    %68 = arith.addf %67, %65 : vector<8x128xf32>
    %cst_20 = arith.constant 2.500000e-01 : f32
    %69 = vector.broadcast %cst_20 : f32 to vector<8x128xf32>
    %70 = arith.mulf %68, %69 : vector<8x128xf32>
    %71 = arith.subf %32, %70 : vector<8x128xf32>
    %72 = arith.subf %43, %70 : vector<8x128xf32>
    %73 = arith.subf %54, %70 : vector<8x128xf32>
    %74 = arith.subf %65, %70 : vector<8x128xf32>
    %75 = arith.mulf %71, %71 : vector<8x128xf32>
    %76 = arith.mulf %72, %72 : vector<8x128xf32>
    %77 = arith.addf %75, %76 : vector<8x128xf32>
    %78 = arith.mulf %73, %73 : vector<8x128xf32>
    %79 = arith.addf %77, %78 : vector<8x128xf32>
    %80 = arith.mulf %74, %74 : vector<8x128xf32>
    %81 = arith.addf %79, %80 : vector<8x128xf32>
    %cst_21 = arith.constant 2.500000e-01 : f32
    %82 = vector.broadcast %cst_21 : f32 to vector<8x128xf32>
    %83 = arith.mulf %81, %82 : vector<8x128xf32>
    %cst_22 = arith.constant 9.99999974E-6 : f32
    %84 = vector.broadcast %cst_22 : f32 to vector<8x128xf32>
    %85 = arith.addf %83, %84 : vector<8x128xf32>
    %86 = math.rsqrt %85 : vector<8x128xf32>
    %87 = arith.mulf %71, %86 : vector<8x128xf32>
    %88 = arith.mulf %72, %86 : vector<8x128xf32>
    %89 = arith.mulf %73, %86 : vector<8x128xf32>
    %90 = arith.mulf %74, %86 : vector<8x128xf32>
    %91 = vector.extract_strided_slice %21 {offsets = [0, 12], sizes = [8, 1], strides = [1, 1]} : vector<8x37xf32> to vector<8x1xf32>
    %92 = vector.broadcast %91 : vector<8x1xf32> to vector<8x128xf32>
    %93 = arith.mulf %87, %92 : vector<8x128xf32>
    %94 = vector.extract_strided_slice %21 {offsets = [0, 13], sizes = [8, 1], strides = [1, 1]} : vector<8x37xf32> to vector<8x1xf32>
    %95 = vector.broadcast %94 : vector<8x1xf32> to vector<8x128xf32>
    %96 = arith.mulf %88, %95 : vector<8x128xf32>
    %97 = arith.addf %93, %96 : vector<8x128xf32>
    %98 = vector.extract_strided_slice %21 {offsets = [0, 14], sizes = [8, 1], strides = [1, 1]} : vector<8x37xf32> to vector<8x1xf32>
    %99 = vector.broadcast %98 : vector<8x1xf32> to vector<8x128xf32>
    %100 = arith.mulf %89, %99 : vector<8x128xf32>
    %101 = arith.addf %97, %100 : vector<8x128xf32>
    %102 = vector.extract_strided_slice %21 {offsets = [0, 15], sizes = [8, 1], strides = [1, 1]} : vector<8x37xf32> to vector<8x1xf32>
    %103 = vector.broadcast %102 : vector<8x1xf32> to vector<8x128xf32>
    %104 = arith.mulf %90, %103 : vector<8x128xf32>
    %105 = arith.addf %101, %104 : vector<8x128xf32>
    %106 = vector.extract_strided_slice %21 {offsets = [0, 28], sizes = [8, 1], strides = [1, 1]} : vector<8x37xf32> to vector<8x1xf32>
    %107 = vector.broadcast %106 : vector<8x1xf32> to vector<8x128xf32>
    %108 = arith.addf %105, %107 : vector<8x128xf32>
    %109 = math.tanh %108 : vector<8x128xf32>
    %110 = vector.extract_strided_slice %21 {offsets = [0, 16], sizes = [8, 1], strides = [1, 1]} : vector<8x37xf32> to vector<8x1xf32>
    %111 = vector.broadcast %110 : vector<8x1xf32> to vector<8x128xf32>
    %112 = arith.mulf %87, %111 : vector<8x128xf32>
    %113 = vector.extract_strided_slice %21 {offsets = [0, 17], sizes = [8, 1], strides = [1, 1]} : vector<8x37xf32> to vector<8x1xf32>
    %114 = vector.broadcast %113 : vector<8x1xf32> to vector<8x128xf32>
    %115 = arith.mulf %88, %114 : vector<8x128xf32>
    %116 = arith.addf %112, %115 : vector<8x128xf32>
    %117 = vector.extract_strided_slice %21 {offsets = [0, 18], sizes = [8, 1], strides = [1, 1]} : vector<8x37xf32> to vector<8x1xf32>
    %118 = vector.broadcast %117 : vector<8x1xf32> to vector<8x128xf32>
    %119 = arith.mulf %89, %118 : vector<8x128xf32>
    %120 = arith.addf %116, %119 : vector<8x128xf32>
    %121 = vector.extract_strided_slice %21 {offsets = [0, 19], sizes = [8, 1], strides = [1, 1]} : vector<8x37xf32> to vector<8x1xf32>
    %122 = vector.broadcast %121 : vector<8x1xf32> to vector<8x128xf32>
    %123 = arith.mulf %90, %122 : vector<8x128xf32>
    %124 = arith.addf %120, %123 : vector<8x128xf32>
    %125 = vector.extract_strided_slice %21 {offsets = [0, 29], sizes = [8, 1], strides = [1, 1]} : vector<8x37xf32> to vector<8x1xf32>
    %126 = vector.broadcast %125 : vector<8x1xf32> to vector<8x128xf32>
    %127 = arith.addf %124, %126 : vector<8x128xf32>
    %128 = math.tanh %127 : vector<8x128xf32>
    %129 = vector.extract_strided_slice %21 {offsets = [0, 20], sizes = [8, 1], strides = [1, 1]} : vector<8x37xf32> to vector<8x1xf32>
    %130 = vector.broadcast %129 : vector<8x1xf32> to vector<8x128xf32>
    %131 = arith.mulf %87, %130 : vector<8x128xf32>
    %132 = vector.extract_strided_slice %21 {offsets = [0, 21], sizes = [8, 1], strides = [1, 1]} : vector<8x37xf32> to vector<8x1xf32>
    %133 = vector.broadcast %132 : vector<8x1xf32> to vector<8x128xf32>
    %134 = arith.mulf %88, %133 : vector<8x128xf32>
    %135 = arith.addf %131, %134 : vector<8x128xf32>
    %136 = vector.extract_strided_slice %21 {offsets = [0, 22], sizes = [8, 1], strides = [1, 1]} : vector<8x37xf32> to vector<8x1xf32>
    %137 = vector.broadcast %136 : vector<8x1xf32> to vector<8x128xf32>
    %138 = arith.mulf %89, %137 : vector<8x128xf32>
    %139 = arith.addf %135, %138 : vector<8x128xf32>
    %140 = vector.extract_strided_slice %21 {offsets = [0, 23], sizes = [8, 1], strides = [1, 1]} : vector<8x37xf32> to vector<8x1xf32>
    %141 = vector.broadcast %140 : vector<8x1xf32> to vector<8x128xf32>
    %142 = arith.mulf %90, %141 : vector<8x128xf32>
    %143 = arith.addf %139, %142 : vector<8x128xf32>
    %144 = vector.extract_strided_slice %21 {offsets = [0, 30], sizes = [8, 1], strides = [1, 1]} : vector<8x37xf32> to vector<8x1xf32>
    %145 = vector.broadcast %144 : vector<8x1xf32> to vector<8x128xf32>
    %146 = arith.addf %143, %145 : vector<8x128xf32>
    %147 = math.tanh %146 : vector<8x128xf32>
    %148 = vector.extract_strided_slice %21 {offsets = [0, 24], sizes = [8, 1], strides = [1, 1]} : vector<8x37xf32> to vector<8x1xf32>
    %149 = vector.broadcast %148 : vector<8x1xf32> to vector<8x128xf32>
    %150 = arith.mulf %87, %149 : vector<8x128xf32>
    %151 = vector.extract_strided_slice %21 {offsets = [0, 25], sizes = [8, 1], strides = [1, 1]} : vector<8x37xf32> to vector<8x1xf32>
    %152 = vector.broadcast %151 : vector<8x1xf32> to vector<8x128xf32>
    %153 = arith.mulf %88, %152 : vector<8x128xf32>
    %154 = arith.addf %150, %153 : vector<8x128xf32>
    %155 = vector.extract_strided_slice %21 {offsets = [0, 26], sizes = [8, 1], strides = [1, 1]} : vector<8x37xf32> to vector<8x1xf32>
    %156 = vector.broadcast %155 : vector<8x1xf32> to vector<8x128xf32>
    %157 = arith.mulf %89, %156 : vector<8x128xf32>
    %158 = arith.addf %154, %157 : vector<8x128xf32>
    %159 = vector.extract_strided_slice %21 {offsets = [0, 27], sizes = [8, 1], strides = [1, 1]} : vector<8x37xf32> to vector<8x1xf32>
    %160 = vector.broadcast %159 : vector<8x1xf32> to vector<8x128xf32>
    %161 = arith.mulf %90, %160 : vector<8x128xf32>
    %162 = arith.addf %158, %161 : vector<8x128xf32>
    %163 = vector.extract_strided_slice %21 {offsets = [0, 31], sizes = [8, 1], strides = [1, 1]} : vector<8x37xf32> to vector<8x1xf32>
    %164 = vector.broadcast %163 : vector<8x1xf32> to vector<8x128xf32>
    %165 = arith.addf %162, %164 : vector<8x128xf32>
    %166 = math.tanh %165 : vector<8x128xf32>
    %167 = arith.addf %109, %128 : vector<8x128xf32>
    %168 = arith.addf %167, %147 : vector<8x128xf32>
    %169 = arith.addf %168, %166 : vector<8x128xf32>
    %cst_23 = arith.constant 2.500000e-01 : f32
    %170 = vector.broadcast %cst_23 : f32 to vector<8x128xf32>
    %171 = arith.mulf %169, %170 : vector<8x128xf32>
    %172 = arith.subf %109, %171 : vector<8x128xf32>
    %173 = arith.subf %128, %171 : vector<8x128xf32>
    %174 = arith.subf %147, %171 : vector<8x128xf32>
    %175 = arith.subf %166, %171 : vector<8x128xf32>
    %176 = arith.mulf %172, %172 : vector<8x128xf32>
    %177 = arith.mulf %173, %173 : vector<8x128xf32>
    %178 = arith.addf %176, %177 : vector<8x128xf32>
    %179 = arith.mulf %174, %174 : vector<8x128xf32>
    %180 = arith.addf %178, %179 : vector<8x128xf32>
    %181 = arith.mulf %175, %175 : vector<8x128xf32>
    %182 = arith.addf %180, %181 : vector<8x128xf32>
    %cst_24 = arith.constant 2.500000e-01 : f32
    %183 = vector.broadcast %cst_24 : f32 to vector<8x128xf32>
    %184 = arith.mulf %182, %183 : vector<8x128xf32>
    %cst_25 = arith.constant 9.99999974E-6 : f32
    %185 = vector.broadcast %cst_25 : f32 to vector<8x128xf32>
    %186 = arith.addf %184, %185 : vector<8x128xf32>
    %187 = math.rsqrt %186 : vector<8x128xf32>
    %188 = arith.mulf %172, %187 : vector<8x128xf32>
    %189 = arith.mulf %173, %187 : vector<8x128xf32>
    %190 = arith.mulf %174, %187 : vector<8x128xf32>
    %191 = arith.mulf %175, %187 : vector<8x128xf32>
    %192 = vector.extract_strided_slice %21 {offsets = [0, 32], sizes = [8, 1], strides = [1, 1]} : vector<8x37xf32> to vector<8x1xf32>
    %193 = vector.broadcast %192 : vector<8x1xf32> to vector<8x128xf32>
    %194 = arith.mulf %188, %193 : vector<8x128xf32>
    %195 = vector.extract_strided_slice %21 {offsets = [0, 33], sizes = [8, 1], strides = [1, 1]} : vector<8x37xf32> to vector<8x1xf32>
    %196 = vector.broadcast %195 : vector<8x1xf32> to vector<8x128xf32>
    %197 = arith.mulf %189, %196 : vector<8x128xf32>
    %198 = arith.addf %194, %197 : vector<8x128xf32>
    %199 = vector.extract_strided_slice %21 {offsets = [0, 34], sizes = [8, 1], strides = [1, 1]} : vector<8x37xf32> to vector<8x1xf32>
    %200 = vector.broadcast %199 : vector<8x1xf32> to vector<8x128xf32>
    %201 = arith.mulf %190, %200 : vector<8x128xf32>
    %202 = arith.addf %198, %201 : vector<8x128xf32>
    %203 = vector.extract_strided_slice %21 {offsets = [0, 35], sizes = [8, 1], strides = [1, 1]} : vector<8x37xf32> to vector<8x1xf32>
    %204 = vector.broadcast %203 : vector<8x1xf32> to vector<8x128xf32>
    %205 = arith.mulf %191, %204 : vector<8x128xf32>
    %206 = arith.addf %202, %205 : vector<8x128xf32>
    %207 = vector.extract_strided_slice %21 {offsets = [0, 36], sizes = [8, 1], strides = [1, 1]} : vector<8x37xf32> to vector<8x1xf32>
    %208 = vector.broadcast %207 : vector<8x1xf32> to vector<8x128xf32>
    %209 = arith.addf %206, %208 : vector<8x128xf32>
    %210 = math.tanh %209 : vector<8x128xf32>
    %cst_26 = arith.constant 5.000000e-01 : f32
    %211 = vector.broadcast %cst_26 : f32 to vector<8x128xf32>
    %212 = arith.mulf %211, %210 : vector<8x128xf32>
    %cst_27 = arith.constant 5.000000e-01 : f32
    %213 = vector.broadcast %cst_27 : f32 to vector<8x128xf32>
    %214 = arith.addf %212, %213 : vector<8x128xf32>
    %c0_28 = arith.constant 0 : index
    %c0_29 = arith.constant 0 : index
    %215 = vector.load %arg3[%c0_28, %c0_29] : memref<16x128xf32, #tpu.memory_space<vmem>>, vector<8x128xf32>
    tpu.vector_store %arg3[%c0_28, %c0_29], %214 {strides = array<i32>} : memref<16x128xf32, #tpu.memory_space<vmem>>, vector<8x128xf32>,
    %c8 = arith.constant 8 : index
    %c0_30 = arith.constant 0 : index
    %216 = vector.load %arg4[%c8, %c0_30] : memref<16x128xf32, #tpu.memory_space<vmem>>, vector<8x128xf32>
    %c8_31 = arith.constant 8 : index
    %c0_32 = arith.constant 0 : index
    %217 = vector.load %arg5[%c8_31, %c0_32] : memref<16x128xf32, #tpu.memory_space<vmem>>, vector<8x128xf32>
    %c8_33 = arith.constant 8 : index
    %c0_34 = arith.constant 0 : index
    %218 = vector.load %arg2[%c8_33, %c0_34] : memref<16x37xf32, #tpu.memory_space<vmem>>, vector<8x37xf32>
    %219 = vector.extract_strided_slice %218 {offsets = [0, 0], sizes = [8, 1], strides = [1, 1]} : vector<8x37xf32> to vector<8x1xf32>
    %220 = vector.broadcast %219 : vector<8x1xf32> to vector<8x128xf32>
    %221 = arith.mulf %216, %220 : vector<8x128xf32>
    %222 = vector.extract_strided_slice %218 {offsets = [0, 1], sizes = [8, 1], strides = [1, 1]} : vector<8x37xf32> to vector<8x1xf32>
    %223 = vector.broadcast %222 : vector<8x1xf32> to vector<8x128xf32>
    %224 = arith.mulf %217, %223 : vector<8x128xf32>
    %225 = arith.addf %221, %224 : vector<8x128xf32>
    %226 = vector.extract_strided_slice %218 {offsets = [0, 8], sizes = [8, 1], strides = [1, 1]} : vector<8x37xf32> to vector<8x1xf32>
    %227 = vector.broadcast %226 : vector<8x1xf32> to vector<8x128xf32>
    %228 = arith.addf %225, %227 : vector<8x128xf32>
    %229 = math.tanh %228 : vector<8x128xf32>
    %230 = vector.extract_strided_slice %218 {offsets = [0, 2], sizes = [8, 1], strides = [1, 1]} : vector<8x37xf32> to vector<8x1xf32>
    %231 = vector.broadcast %230 : vector<8x1xf32> to vector<8x128xf32>
    %232 = arith.mulf %216, %231 : vector<8x128xf32>
    %233 = vector.extract_strided_slice %218 {offsets = [0, 3], sizes = [8, 1], strides = [1, 1]} : vector<8x37xf32> to vector<8x1xf32>
    %234 = vector.broadcast %233 : vector<8x1xf32> to vector<8x128xf32>
    %235 = arith.mulf %217, %234 : vector<8x128xf32>
    %236 = arith.addf %232, %235 : vector<8x128xf32>
    %237 = vector.extract_strided_slice %218 {offsets = [0, 9], sizes = [8, 1], strides = [1, 1]} : vector<8x37xf32> to vector<8x1xf32>
    %238 = vector.broadcast %237 : vector<8x1xf32> to vector<8x128xf32>
    %239 = arith.addf %236, %238 : vector<8x128xf32>
    %240 = math.tanh %239 : vector<8x128xf32>
    %241 = vector.extract_strided_slice %218 {offsets = [0, 4], sizes = [8, 1], strides = [1, 1]} : vector<8x37xf32> to vector<8x1xf32>
    %242 = vector.broadcast %241 : vector<8x1xf32> to vector<8x128xf32>
    %243 = arith.mulf %216, %242 : vector<8x128xf32>
    %244 = vector.extract_strided_slice %218 {offsets = [0, 5], sizes = [8, 1], strides = [1, 1]} : vector<8x37xf32> to vector<8x1xf32>
    %245 = vector.broadcast %244 : vector<8x1xf32> to vector<8x128xf32>
    %246 = arith.mulf %217, %245 : vector<8x128xf32>
    %247 = arith.addf %243, %246 : vector<8x128xf32>
    %248 = vector.extract_strided_slice %218 {offsets = [0, 10], sizes = [8, 1], strides = [1, 1]} : vector<8x37xf32> to vector<8x1xf32>
    %249 = vector.broadcast %248 : vector<8x1xf32> to vector<8x128xf32>
    %250 = arith.addf %247, %249 : vector<8x128xf32>
    %251 = math.tanh %250 : vector<8x128xf32>
    %252 = vector.extract_strided_slice %218 {offsets = [0, 6], sizes = [8, 1], strides = [1, 1]} : vector<8x37xf32> to vector<8x1xf32>
    %253 = vector.broadcast %252 : vector<8x1xf32> to vector<8x128xf32>
    %254 = arith.mulf %216, %253 : vector<8x128xf32>
    %255 = vector.extract_strided_slice %218 {offsets = [0, 7], sizes = [8, 1], strides = [1, 1]} : vector<8x37xf32> to vector<8x1xf32>
    %256 = vector.broadcast %255 : vector<8x1xf32> to vector<8x128xf32>
    %257 = arith.mulf %217, %256 : vector<8x128xf32>
    %258 = arith.addf %254, %257 : vector<8x128xf32>
    %259 = vector.extract_strided_slice %218 {offsets = [0, 11], sizes = [8, 1], strides = [1, 1]} : vector<8x37xf32> to vector<8x1xf32>
    %260 = vector.broadcast %259 : vector<8x1xf32> to vector<8x128xf32>
    %261 = arith.addf %258, %260 : vector<8x128xf32>
    %262 = math.tanh %261 : vector<8x128xf32>
    %263 = arith.addf %229, %240 : vector<8x128xf32>
    %264 = arith.addf %263, %251 : vector<8x128xf32>
    %265 = arith.addf %264, %262 : vector<8x128xf32>
    %cst_35 = arith.constant 2.500000e-01 : f32
    %266 = vector.broadcast %cst_35 : f32 to vector<8x128xf32>
    %267 = arith.mulf %265, %266 : vector<8x128xf32>
    %268 = arith.subf %229, %267 : vector<8x128xf32>
    %269 = arith.subf %240, %267 : vector<8x128xf32>
    %270 = arith.subf %251, %267 : vector<8x128xf32>
    %271 = arith.subf %262, %267 : vector<8x128xf32>
    %272 = arith.mulf %268, %268 : vector<8x128xf32>
    %273 = arith.mulf %269, %269 : vector<8x128xf32>
    %274 = arith.addf %272, %273 : vector<8x128xf32>
    %275 = arith.mulf %270, %270 : vector<8x128xf32>
    %276 = arith.addf %274, %275 : vector<8x128xf32>
    %277 = arith.mulf %271, %271 : vector<8x128xf32>
    %278 = arith.addf %276, %277 : vector<8x128xf32>
    %cst_36 = arith.constant 2.500000e-01 : f32
    %279 = vector.broadcast %cst_36 : f32 to vector<8x128xf32>
    %280 = arith.mulf %278, %279 : vector<8x128xf32>
    %cst_37 = arith.constant 9.99999974E-6 : f32
    %281 = vector.broadcast %cst_37 : f32 to vector<8x128xf32>
    %282 = arith.addf %280, %281 : vector<8x128xf32>
    %283 = math.rsqrt %282 : vector<8x128xf32>
    %284 = arith.mulf %268, %283 : vector<8x128xf32>
    %285 = arith.mulf %269, %283 : vector<8x128xf32>
    %286 = arith.mulf %270, %283 : vector<8x128xf32>
    %287 = arith.mulf %271, %283 : vector<8x128xf32>
    %288 = vector.extract_strided_slice %218 {offsets = [0, 12], sizes = [8, 1], strides = [1, 1]} : vector<8x37xf32> to vector<8x1xf32>
    %289 = vector.broadcast %288 : vector<8x1xf32> to vector<8x128xf32>
    %290 = arith.mulf %284, %289 : vector<8x128xf32>
    %291 = vector.extract_strided_slice %218 {offsets = [0, 13], sizes = [8, 1], strides = [1, 1]} : vector<8x37xf32> to vector<8x1xf32>
    %292 = vector.broadcast %291 : vector<8x1xf32> to vector<8x128xf32>
    %293 = arith.mulf %285, %292 : vector<8x128xf32>
    %294 = arith.addf %290, %293 : vector<8x128xf32>
    %295 = vector.extract_strided_slice %218 {offsets = [0, 14], sizes = [8, 1], strides = [1, 1]} : vector<8x37xf32> to vector<8x1xf32>
    %296 = vector.broadcast %295 : vector<8x1xf32> to vector<8x128xf32>
    %297 = arith.mulf %286, %296 : vector<8x128xf32>
    %298 = arith.addf %294, %297 : vector<8x128xf32>
    %299 = vector.extract_strided_slice %218 {offsets = [0, 15], sizes = [8, 1], strides = [1, 1]} : vector<8x37xf32> to vector<8x1xf32>
    %300 = vector.broadcast %299 : vector<8x1xf32> to vector<8x128xf32>
    %301 = arith.mulf %287, %300 : vector<8x128xf32>
    %302 = arith.addf %298, %301 : vector<8x128xf32>
    %303 = vector.extract_strided_slice %218 {offsets = [0, 28], sizes = [8, 1], strides = [1, 1]} : vector<8x37xf32> to vector<8x1xf32>
    %304 = vector.broadcast %303 : vector<8x1xf32> to vector<8x128xf32>
    %305 = arith.addf %302, %304 : vector<8x128xf32>
    %306 = math.tanh %305 : vector<8x128xf32>
    %307 = vector.extract_strided_slice %218 {offsets = [0, 16], sizes = [8, 1], strides = [1, 1]} : vector<8x37xf32> to vector<8x1xf32>
    %308 = vector.broadcast %307 : vector<8x1xf32> to vector<8x128xf32>
    %309 = arith.mulf %284, %308 : vector<8x128xf32>
    %310 = vector.extract_strided_slice %218 {offsets = [0, 17], sizes = [8, 1], strides = [1, 1]} : vector<8x37xf32> to vector<8x1xf32>
    %311 = vector.broadcast %310 : vector<8x1xf32> to vector<8x128xf32>
    %312 = arith.mulf %285, %311 : vector<8x128xf32>
    %313 = arith.addf %309, %312 : vector<8x128xf32>
    %314 = vector.extract_strided_slice %218 {offsets = [0, 18], sizes = [8, 1], strides = [1, 1]} : vector<8x37xf32> to vector<8x1xf32>
    %315 = vector.broadcast %314 : vector<8x1xf32> to vector<8x128xf32>
    %316 = arith.mulf %286, %315 : vector<8x128xf32>
    %317 = arith.addf %313, %316 : vector<8x128xf32>
    %318 = vector.extract_strided_slice %218 {offsets = [0, 19], sizes = [8, 1], strides = [1, 1]} : vector<8x37xf32> to vector<8x1xf32>
    %319 = vector.broadcast %318 : vector<8x1xf32> to vector<8x128xf32>
    %320 = arith.mulf %287, %319 : vector<8x128xf32>
    %321 = arith.addf %317, %320 : vector<8x128xf32>
    %322 = vector.extract_strided_slice %218 {offsets = [0, 29], sizes = [8, 1], strides = [1, 1]} : vector<8x37xf32> to vector<8x1xf32>
    %323 = vector.broadcast %322 : vector<8x1xf32> to vector<8x128xf32>
    %324 = arith.addf %321, %323 : vector<8x128xf32>
    %325 = math.tanh %324 : vector<8x128xf32>
    %326 = vector.extract_strided_slice %218 {offsets = [0, 20], sizes = [8, 1], strides = [1, 1]} : vector<8x37xf32> to vector<8x1xf32>
    %327 = vector.broadcast %326 : vector<8x1xf32> to vector<8x128xf32>
    %328 = arith.mulf %284, %327 : vector<8x128xf32>
    %329 = vector.extract_strided_slice %218 {offsets = [0, 21], sizes = [8, 1], strides = [1, 1]} : vector<8x37xf32> to vector<8x1xf32>
    %330 = vector.broadcast %329 : vector<8x1xf32> to vector<8x128xf32>
    %331 = arith.mulf %285, %330 : vector<8x128xf32>
    %332 = arith.addf %328, %331 : vector<8x128xf32>
    %333 = vector.extract_strided_slice %218 {offsets = [0, 22], sizes = [8, 1], strides = [1, 1]} : vector<8x37xf32> to vector<8x1xf32>
    %334 = vector.broadcast %333 : vector<8x1xf32> to vector<8x128xf32>
    %335 = arith.mulf %286, %334 : vector<8x128xf32>
    %336 = arith.addf %332, %335 : vector<8x128xf32>
    %337 = vector.extract_strided_slice %218 {offsets = [0, 23], sizes = [8, 1], strides = [1, 1]} : vector<8x37xf32> to vector<8x1xf32>
    %338 = vector.broadcast %337 : vector<8x1xf32> to vector<8x128xf32>
    %339 = arith.mulf %287, %338 : vector<8x128xf32>
    %340 = arith.addf %336, %339 : vector<8x128xf32>
    %341 = vector.extract_strided_slice %218 {offsets = [0, 30], sizes = [8, 1], strides = [1, 1]} : vector<8x37xf32> to vector<8x1xf32>
    %342 = vector.broadcast %341 : vector<8x1xf32> to vector<8x128xf32>
    %343 = arith.addf %340, %342 : vector<8x128xf32>
    %344 = math.tanh %343 : vector<8x128xf32>
    %345 = vector.extract_strided_slice %218 {offsets = [0, 24], sizes = [8, 1], strides = [1, 1]} : vector<8x37xf32> to vector<8x1xf32>
    %346 = vector.broadcast %345 : vector<8x1xf32> to vector<8x128xf32>
    %347 = arith.mulf %284, %346 : vector<8x128xf32>
    %348 = vector.extract_strided_slice %218 {offsets = [0, 25], sizes = [8, 1], strides = [1, 1]} : vector<8x37xf32> to vector<8x1xf32>
    %349 = vector.broadcast %348 : vector<8x1xf32> to vector<8x128xf32>
    %350 = arith.mulf %285, %349 : vector<8x128xf32>
    %351 = arith.addf %347, %350 : vector<8x128xf32>
    %352 = vector.extract_strided_slice %218 {offsets = [0, 26], sizes = [8, 1], strides = [1, 1]} : vector<8x37xf32> to vector<8x1xf32>
    %353 = vector.broadcast %352 : vector<8x1xf32> to vector<8x128xf32>
    %354 = arith.mulf %286, %353 : vector<8x128xf32>
    %355 = arith.addf %351, %354 : vector<8x128xf32>
    %356 = vector.extract_strided_slice %218 {offsets = [0, 27], sizes = [8, 1], strides = [1, 1]} : vector<8x37xf32> to vector<8x1xf32>
    %357 = vector.broadcast %356 : vector<8x1xf32> to vector<8x128xf32>
    %358 = arith.mulf %287, %357 : vector<8x128xf32>
    %359 = arith.addf %355, %358 : vector<8x128xf32>
    %360 = vector.extract_strided_slice %218 {offsets = [0, 31], sizes = [8, 1], strides = [1, 1]} : vector<8x37xf32> to vector<8x1xf32>
    %361 = vector.broadcast %360 : vector<8x1xf32> to vector<8x128xf32>
    %362 = arith.addf %359, %361 : vector<8x128xf32>
    %363 = math.tanh %362 : vector<8x128xf32>
    %364 = arith.addf %306, %325 : vector<8x128xf32>
    %365 = arith.addf %364, %344 : vector<8x128xf32>
    %366 = arith.addf %365, %363 : vector<8x128xf32>
    %cst_38 = arith.constant 2.500000e-01 : f32
    %367 = vector.broadcast %cst_38 : f32 to vector<8x128xf32>
    %368 = arith.mulf %366, %367 : vector<8x128xf32>
    %369 = arith.subf %306, %368 : vector<8x128xf32>
    %370 = arith.subf %325, %368 : vector<8x128xf32>
    %371 = arith.subf %344, %368 : vector<8x128xf32>
    %372 = arith.subf %363, %368 : vector<8x128xf32>
    %373 = arith.mulf %369, %369 : vector<8x128xf32>
    %374 = arith.mulf %370, %370 : vector<8x128xf32>
    %375 = arith.addf %373, %374 : vector<8x128xf32>
    %376 = arith.mulf %371, %371 : vector<8x128xf32>
    %377 = arith.addf %375, %376 : vector<8x128xf32>
    %378 = arith.mulf %372, %372 : vector<8x128xf32>
    %379 = arith.addf %377, %378 : vector<8x128xf32>
    %cst_39 = arith.constant 2.500000e-01 : f32
    %380 = vector.broadcast %cst_39 : f32 to vector<8x128xf32>
    %381 = arith.mulf %379, %380 : vector<8x128xf32>
    %cst_40 = arith.constant 9.99999974E-6 : f32
    %382 = vector.broadcast %cst_40 : f32 to vector<8x128xf32>
    %383 = arith.addf %381, %382 : vector<8x128xf32>
    %384 = math.rsqrt %383 : vector<8x128xf32>
    %385 = arith.mulf %369, %384 : vector<8x128xf32>
    %386 = arith.mulf %370, %384 : vector<8x128xf32>
    %387 = arith.mulf %371, %384 : vector<8x128xf32>
    %388 = arith.mulf %372, %384 : vector<8x128xf32>
    %389 = vector.extract_strided_slice %218 {offsets = [0, 32], sizes = [8, 1], strides = [1, 1]} : vector<8x37xf32> to vector<8x1xf32>
    %390 = vector.broadcast %389 : vector<8x1xf32> to vector<8x128xf32>
    %391 = arith.mulf %385, %390 : vector<8x128xf32>
    %392 = vector.extract_strided_slice %218 {offsets = [0, 33], sizes = [8, 1], strides = [1, 1]} : vector<8x37xf32> to vector<8x1xf32>
    %393 = vector.broadcast %392 : vector<8x1xf32> to vector<8x128xf32>
    %394 = arith.mulf %386, %393 : vector<8x128xf32>
    %395 = arith.addf %391, %394 : vector<8x128xf32>
    %396 = vector.extract_strided_slice %218 {offsets = [0, 34], sizes = [8, 1], strides = [1, 1]} : vector<8x37xf32> to vector<8x1xf32>
    %397 = vector.broadcast %396 : vector<8x1xf32> to vector<8x128xf32>
    %398 = arith.mulf %387, %397 : vector<8x128xf32>
    %399 = arith.addf %395, %398 : vector<8x128xf32>
    %400 = vector.extract_strided_slice %218 {offsets = [0, 35], sizes = [8, 1], strides = [1, 1]} : vector<8x37xf32> to vector<8x1xf32>
    %401 = vector.broadcast %400 : vector<8x1xf32> to vector<8x128xf32>
    %402 = arith.mulf %388, %401 : vector<8x128xf32>
    %403 = arith.addf %399, %402 : vector<8x128xf32>
    %404 = vector.extract_strided_slice %218 {offsets = [0, 36], sizes = [8, 1], strides = [1, 1]} : vector<8x37xf32> to vector<8x1xf32>
    %405 = vector.broadcast %404 : vector<8x1xf32> to vector<8x128xf32>
    %406 = arith.addf %403, %405 : vector<8x128xf32>
    %407 = math.tanh %406 : vector<8x128xf32>
    %cst_41 = arith.constant 5.000000e-01 : f32
    %408 = vector.broadcast %cst_41 : f32 to vector<8x128xf32>
    %409 = arith.mulf %408, %407 : vector<8x128xf32>
    %cst_42 = arith.constant 5.000000e-01 : f32
    %410 = vector.broadcast %cst_42 : f32 to vector<8x128xf32>
    %411 = arith.addf %409, %410 : vector<8x128xf32>
    %c8_43 = arith.constant 8 : index
    %c0_44 = arith.constant 0 : index
    %412 = vector.load %arg3[%c8_43, %c0_44] : memref<16x128xf32, #tpu.memory_space<vmem>>, vector<8x128xf32>
    tpu.vector_store %arg3[%c8_43, %c0_44], %411 {strides = array<i32>} : memref<16x128xf32, #tpu.memory_space<vmem>>, vector<8x128xf32>,
    return
  }
  func.func @transform_0(%arg0: i32) -> (i32, i32) {
    %c0_i32 = arith.constant 0 : i32
    %c0_i32_0 = arith.constant 0 : i32
    return %c0_i32, %arg0 : i32, i32
  }
  func.func @transform_1(%arg0: i32) -> (i32, i32) {
    %c0_i32 = arith.constant 0 : i32
    %c0_i32_0 = arith.constant 0 : i32
    %c0_i32_1 = arith.constant 0 : i32
    return %c0_i32, %c0_i32_0 : i32, i32
  }
  func.func @transform_2(%arg0: i32) -> (i32, i32) {
    %c0_i32 = arith.constant 0 : i32
    %c0_i32_0 = arith.constant 0 : i32
    return %c0_i32, %arg0 : i32, i32
  }
}

</mosaic_0001>

<bundles_post_ra>
// kernel: actor_forward.1
= control target key start
LH: loop header
LB: loop body
LE: loop exit
PB: predicated region body
PF: predicated region fallthrough
CT: control target
= control target key end

     0   :  { %v712_v0 = vmov 8   ;;  %v713_v1 = vmov 0   ;;  %v714_v4 = vmov 2   ;;  %v715_v5 = vmov 11   ;;  %s983_s1 = inlined_call_operand.vmem [shape: f32[16,37], index: 1, kind: input, shape index: {}]   ;;  %s984_s0 = inlined_call_operand.vmem [shape: f32[3,128], index: 0, kind: input, shape index: {}]   ;;  %s985_s2 = inlined_call_operand.vmem [shape: f32[16,128], index: 2, kind: output, shape index: {}]  }
   0x1   :  { %603 = vset.pattern.permute.xlu1 %v712_v0  ;;  %602 = vset.pattern.permute.xlu0 %v713_v1  ;;  %v770_v2 = vld [vmem:[%s983_s1] sm:$0xff]  ;;  %v14_v6 = vlaneseq  ;;  %v716_v8 = vmov 3   ;;  %v717_v9 = vmov 14   ;;  %v718_v16 = vmov 4   ;;  %v794_v20 = vld [vmem:[%s983_s1 + $0x8] sm:$0xff] }
   0x2   :  { %48 = vperm.xlu1 %603, %v770_v2   ;;  %37 = vperm.xlu0 %602, %v770_v2   ;;  %v13_v3 = vld [vmem:[%s984_s0] sm:$0x7]  ;;  %v719_v17 = vmov 19   ;;  %v720_v18 = vmov 5   ;;  %v721_v19 = vmov 1   ;;  %v722_v21 = vmov 0.0  }
   0x3   :  { %19 = vst [vmem:[#allocation3] sm:$0x7] %v13_v3  ;;  %25 = vst [vmem:[#allocation3 + $0x3] sm:$0x7] %v13_v3  ;;  %v15_v7 = vshrl.u32 %v14_v6, 7  ;;  %v723_v22 = vmov 6  }
   0x4   :  { %31 = vst [vmem:[#allocation3 + $0x6] sm:$0x7] %v13_v3  ;;  %12 = vst [vmem:[#allocation3 + $0x9] sm:$0x7f] %v722_v21  ;;  %v724_v23 = vmov 7   ;;  %v725_v24 = vmov 9  }
   0x5   :  { %v16_v10 = vsub.s32 0, %v15_v7  ;;  %v22_v11 = vsub.s32 1, %v15_v7  ;;  %v28_v12 = vsub.s32 2, %v15_v7  ;;  %11 = vst [vmem:[#allocation2 + $0x9] sm:$0x7f] %v722_v21  ;;  %v726_v25 = vmov 12  }
   0x6   :  { %604 = vset.pattern.permute.xlu1 %v714_v4  ;;  %610 = vset.pattern.permute.xlu0 %v715_v5  ;;  %v727_v26 = vmov 13   ;;  %v728_v27 = vmov 10   ;;  %v729_v28 = vmov 15   ;;  %v730_v29 = vmov 28  }
   0x7   :  { %54 = vperm.xlu1 %604, %v770_v2   ;;  %99 = vperm.xlu0 %610, %v770_v2   ;;  %v17_v13 = vrot.slane %v13_v3, %v16_v10  ;;  %v23_v14 = vrot.slane %v13_v3, %v22_v11  ;;  %v29_v15 = vrot.slane %v13_v3, %v28_v12  ;;  %v731_v30 = vmov 21  }
   0x8   :  { %v732_v31 = vmov 17   ;;  %v733_v32 = vmov 16   ;;  %v734_v33 = vmov 18   ;;  %v735_v34 = vmov 29  }
   0x9   :  { %18 = vst [vmem:[#allocation2] sm:$0x7] %v17_v13  ;;  %24 = vst [vmem:[#allocation2 + $0x3] sm:$0x7] %v23_v14  ;;  %v736_v35 = vmov 22   ;;  %v737_v36 = vmov 24  }
   0xa   :  { %30 = vst [vmem:[#allocation2 + $0x6] sm:$0x7] %v29_v15  ;;  %v738_v37 = vmov 26   ;;  %v739_v38 = vmov 27   ;;  %v740_v39 = vmov 30   ;;  %v741_v40 = vmov 20  }
   0xb   :  { %605 = vset.pattern.permute.xlu1 %v716_v8  ;;  %613 = vset.pattern.permute.xlu0 %v717_v9  ;;  %v742_v41 = vmov 32   ;;  %v743_v42 = vmov 33   ;;  %v744_v45 = vmov 35   ;;  %v33_v49 = vld [vmem:[#allocation3] sm:$0xff]  ;;  %v745_v50 = vmov 36  }
   0xc   :  { %59 = vperm.xlu1 %605, %v770_v2   ;;  %138 = vperm.xlu0 %613, %v770_v2  }
  0x10   :  { %606 = vset.pattern.permute.xlu1 %v718_v16  ;;  %618 = vset.pattern.permute.xlu0 %v719_v17 }
  0x11   :  { %71 = vperm.xlu1 %606, %v770_v2   ;;  %173 = vperm.xlu0 %618, %v770_v2   ;;  %v32_v48 = vld [vmem:[#allocation2] sm:$0xff] }
  0x15   :  { %607 = vset.pattern.permute.xlu1 %v720_v18  ;;  %619 = vset.pattern.permute.xlu0 %v721_v19 }
  0x16   :  { %76 = vperm.xlu1 %607, %v770_v2   ;;  %42 = vperm.xlu0 %619, %v770_v2  }
  0x1a   :  { %608 = vset.pattern.permute.xlu1 %v723_v22  ;;  %306 = vperm.xlu0 %619, %v794_v20  }
  0x1b   :  { %88 = vperm.xlu1 %608, %v770_v2  }
  0x1e   :  { %624 = vset.pattern.permute.xlu0 %v718_v16 }
  0x1f   :  { %609 = vset.pattern.permute.xlu1 %v724_v23  ;;  %335 = vperm.xlu0 %624, %v794_v20  }
  0x20   :  { %93 = vperm.xlu1 %609, %v770_v2  }
  0x23   :  { %625 = vset.pattern.permute.xlu0 %v725_v24 }
  0x24   :  { %611 = vset.pattern.permute.xlu1 %v726_v25  ;;  %65 = vperm.xlu0 %625, %v770_v2  }
  0x25   :  { %127 = vperm.xlu1 %611, %v770_v2  }
  0x28   :  { %329 = vperm.xlu0 %625, %v794_v20  }
  0x29   :  { %612 = vset.pattern.permute.xlu1 %v727_v26 }
  0x2a   :  { %132 = vperm.xlu1 %612, %v770_v2  }
  0x2c   :  { %628 = vset.pattern.permute.xlu0 %v728_v27 }
  0x2d   :  { %82 = vperm.xlu0 %628, %v770_v2  }
  0x2e   :  { %614 = vset.pattern.permute.xlu1 %v729_v28 }
  0x2f   :  { %144 = vperm.xlu1 %614, %v770_v2  }
  0x31   :  { %346 = vperm.xlu0 %628, %v794_v20  }
  0x33   :  { %615 = vset.pattern.permute.xlu1 %v730_v29 }
  0x34   :  { %150 = vperm.xlu1 %615, %v770_v2  }
  0x35   :  { %633 = vset.pattern.permute.xlu0 %v731_v30 }
  0x36   :  { %190 = vperm.xlu0 %633, %v770_v2  }
  0x38   :  { %616 = vset.pattern.permute.xlu1 %v732_v31 }
  0x39   :  { %161 = vperm.xlu1 %616, %v770_v2  }
  0x3a   :  { %634 = vset.pattern.permute.xlu0 %v733_v32 }
  0x3b   :  { %156 = vperm.xlu0 %634, %v770_v2  }
  0x3d   :  { %617 = vset.pattern.permute.xlu1 %v734_v33 }
  0x3e   :  { %167 = vperm.xlu1 %617, %v770_v2  }
  0x3f   :  { %420 = vperm.xlu0 %634, %v794_v20  }
  0x42   :  { %620 = vset.pattern.permute.xlu1 %v735_v34 }
  0x43   :  { %179 = vperm.xlu1 %620, %v770_v2   ;;  %639 = vset.pattern.permute.xlu0 %v734_v33 }
  0x44   :  { %431 = vperm.xlu0 %639, %v794_v20  }
  0x47   :  { %621 = vset.pattern.permute.xlu1 %v713_v1 }
  0x48   :  { %301 = vperm.xlu1 %621, %v794_v20   ;;  %642 = vset.pattern.permute.xlu0 %v736_v35 }
  0x49   :  { %196 = vperm.xlu0 %642, %v770_v2  }
  0x4c   :  { %622 = vset.pattern.permute.xlu1 %v714_v4  ;;  %v746_v4 = vmov 25  }
  0x4d   :  { %318 = vperm.xlu1 %622, %v794_v20   ;;  %645 = vset.pattern.permute.xlu0 %v729_v28 }
  0x4e   :  { %408 = vperm.xlu0 %645, %v794_v20  }
  0x51   :  { %623 = vset.pattern.permute.xlu1 %v716_v8 }
  0x52   :  { %323 = vperm.xlu1 %623, %v794_v20   ;;  %648 = vset.pattern.permute.xlu0 %v737_v36 }
  0x53   :  { %478 = vperm.xlu0 %648, %v794_v20  }
  0x56   :  { %626 = vset.pattern.permute.xlu1 %v720_v18 }
  0x57   :  { %340 = vperm.xlu1 %626, %v794_v20   ;;  %651 = vset.pattern.permute.xlu0 %v738_v37 }
  0x58   :  { %225 = vperm.xlu0 %651, %v770_v2  }
  0x5b   :  { %627 = vset.pattern.permute.xlu1 %v712_v0 }
  0x5c   :  { %312 = vperm.xlu1 %627, %v794_v20   ;;  %653 = vset.pattern.permute.xlu0 %v739_v38 }
  0x5d   :  { %231 = vperm.xlu0 %653, %v770_v2  }
  0x60   :  { %629 = vset.pattern.permute.xlu1 %v723_v22  ;;  %v747_v22 = vmov 23  }
  0x61   :  { %352 = vperm.xlu1 %629, %v794_v20   ;;  %495 = vperm.xlu0 %653, %v794_v20  }
  0x65   :  { %630 = vset.pattern.permute.xlu1 %v724_v23  ;;  %657 = vset.pattern.permute.xlu0 %v740_v39 }
  0x66   :  { %357 = vperm.xlu1 %630, %v794_v20   ;;  %472 = vperm.xlu0 %657, %v794_v20  }
  0x6a   :  { %631 = vset.pattern.permute.xlu1 %v715_v5  ;;  %659 = vset.pattern.permute.xlu0 %v742_v41 }
  0x6b   :  { %363 = vperm.xlu1 %631, %v794_v20   ;;  %265 = vperm.xlu0 %659, %v770_v2  }
  0x6f   :  { %632 = vset.pattern.permute.xlu1 %v741_v40  ;;  %662 = vset.pattern.permute.xlu0 %v743_v42 }
  0x70   :  { %185 = vperm.xlu1 %632, %v770_v2   ;;  %534 = vperm.xlu0 %662, %v794_v20  }
  0x74   :  { %635 = vset.pattern.permute.xlu1 %v726_v25  ;;  %664 = vset.pattern.permute.xlu0 %v744_v45 }
  0x75   :  { %391 = vperm.xlu1 %635, %v794_v20   ;;  %282 = vperm.xlu0 %664, %v770_v2  }
  0x79   :  { %636 = vset.pattern.permute.xlu1 %v727_v26  ;;  %667 = vset.pattern.permute.xlu0 %v745_v50 }
  0x7a   :  { %396 = vperm.xlu1 %636, %v794_v20   ;;  %552 = vperm.xlu0 %667, %v794_v20  }
  0x7d   :  { %v49_v43 = vpop.permute.xlu1 %48  ;;  %v38_v44 = vpop.permute.xlu0 %37 }
  0x7e   :  { %637 = vset.pattern.permute.xlu1 %v732_v31  ;;  %v40_v0 = vmul.f32 %v38_v44, %v32_v48 }
  0x7f   :  { %425 = vperm.xlu1 %637, %v794_v20  }
  0x82   :  { %v55_v46 = vpop.permute.xlu1 %54  ;;  %v100_v47 = vpop.permute.xlu0 %99 }
  0x83   :  { %638 = vset.pattern.permute.xlu1 %v717_v9  ;;  %v57_v53 = vmul.f32 %v55_v46, %v32_v48 }
  0x84   :  { %402 = vperm.xlu1 %638, %v794_v20  }
  0x87   :  { %v60_v51 = vpop.permute.xlu1 %59  ;;  %v867_v52 = vpop.permute.xlu0 %138 }
  0x88   :  { %v62_v54 = vmul.f32 %v60_v51, %v33_v49  ;;  %640 = vset.pattern.permute.xlu1 %v741_v40 }
  0x89   :  { %449 = vperm.xlu1 %640, %v794_v20  }
  0x8a   :  { %v63_v55 = vadd.f32 %v62_v54, %v57_v53  ;;  %v748_v53 = vmov 31  }
  0x8c   :  { %v72_v56 = vpop.permute.xlu1 %71  ;;  %v870_v57 = vpop.permute.xlu0 %173 }
  0x8d   :  { %641 = vset.pattern.permute.xlu1 %v731_v30  ;;  %v74_v60 = vmul.f32 %v72_v56, %v32_v48 }
  0x8e   :  { %454 = vperm.xlu1 %641, %v794_v20  }
  0x91   :  { %v77_v58 = vpop.permute.xlu1 %76  ;;  %v43_v59 = vpop.permute.xlu0 %42 }
  0x92   :  { %v79_v61 = vmul.f32 %v77_v58, %v33_v49  ;;  %643 = vset.pattern.permute.xlu1 %v737_v36  ;;  %v45_v1 = vmul.f32 %v43_v59, %v33_v49 }
  0x93   :  { %214 = vperm.xlu1 %643, %v770_v2  }
  0x94   :  { %v80_v62 = vadd.f32 %v79_v61, %v74_v60  ;;  %v46_v5 = vadd.f32 %v45_v1, %v40_v0  ;;  %v297_v60 = vld [vmem:[#allocation3 + $0x8] sm:$0xff]  ;;  %v296_v61 = vld [vmem:[#allocation2 + $0x8] sm:$0xff] }
  0x95   :  { %v876_v63 = vpop.permute.xlu0 %306 }
  0x96   :  { %v89_v3 = vpop.permute.xlu1 %88  ;;  %v51_v10 = vadd.f32 %v49_v43, %v46_v5  ;;  %v309_v1 = vmul.f32 %v876_v63, %v297_v60 }
  0x97   :  { %644 = vset.pattern.permute.xlu1 %v746_v4  ;;  %v91_v8 = vmul.f32 %v89_v3, %v32_v48 }
  0x98   :  { %219 = vperm.xlu1 %644, %v770_v2   ;;  %668 = vtanh.f32 %v51_v10 }
  0x9a   :  { %v879_v6 = vpop.permute.xlu0 %335 }
  0x9b   :  { %v94_v7 = vpop.permute.xlu1 %93  ;;  %v338_v5 = vmul.f32 %v879_v6, %v296_v61 }
  0x9c   :  { %v96_v9 = vmul.f32 %v94_v7, %v33_v49  ;;  %646 = vset.pattern.permute.xlu1 %v719_v17 }
  0x9d   :  { %437 = vperm.xlu1 %646, %v794_v20  }
  0x9e   :  { %v97_v11 = vadd.f32 %v96_v9, %v91_v8 }
  0x9f   :  { %v66_v12 = vpop.permute.xlu0 %65 }
  0xa0   :  { %v68_v13 = vadd.f32 %v66_v12, %v63_v55  ;;  %v883_v14 = vpop.permute.xlu1 %127  ;;  %v102_v18 = vadd.f32 %v100_v47, %v97_v11 }
  0xa1   :  { %647 = vset.pattern.permute.xlu1 %v736_v35 }
  0xa2   :  { %460 = vperm.xlu1 %647, %v794_v20   ;;  %670 = vtanh.f32 %v68_v13  ;;  %v749_v13 = vmov 34  }
  0xa3   :  { %v887_v15 = vpop.permute.xlu0 %329 }
  0xa5   :  { %v889_v16 = vpop.permute.xlu1 %132  ;;  %v669_v23 = vpop.eup %668 }
  0xa6   :  { %649 = vset.pattern.permute.xlu1 %v746_v4 }
  0xa7   :  { %483 = vperm.xlu1 %649, %v794_v20  }
  0xa8   :  { %v83_v17 = vpop.permute.xlu0 %82 }
  0xa9   :  { %v85_v19 = vadd.f32 %v83_v17, %v80_v62 }
  0xaa   :  { %v892_v21 = vpop.permute.xlu1 %144 }
  0xab   :  { %672 = vtanh.f32 %v85_v19  ;;  %650 = vset.pattern.permute.xlu1 %v747_v22 }
  0xac   :  { %202 = vperm.xlu1 %650, %v770_v2   ;;  %674 = vtanh.f32 %v102_v18  ;;  %v347_v59 = vpop.permute.xlu0 %346 }
  0xaf   :  { %v895_v24 = vpop.permute.xlu1 %150  ;;  %v671_v25 = vpop.eup %670 }
  0xb0   :  { %466 = vperm.xlu1 %650, %v794_v20   ;;  %v104_v26 = vadd.f32 %v671_v25, %v669_v23 }
  0xb1   :  { %v191_v62 = vpop.permute.xlu0 %190 }
  0xb4   :  { %652 = vset.pattern.permute.xlu1 %v738_v37  ;;  %v899_v27 = vpop.permute.xlu1 %161 }
  0xb5   :  { %489 = vperm.xlu1 %652, %v794_v20  }
  0xb8   :  { %v673_v28 = vpop.eup %672 }
  0xb9   :  { %v105_v30 = vadd.f32 %v673_v28, %v104_v26  ;;  %654 = vset.pattern.permute.xlu1 %v730_v29  ;;  %v903_v31 = vpop.permute.xlu1 %167  ;;  %v675_v32 = vpop.eup %674 }
  0xba   :  { %414 = vperm.xlu1 %654, %v794_v20  }
  0xbb   :  { %v106_v33 = vadd.f32 %v675_v32, %v105_v30 }
  0xbd   :  { %v107_v35 = vmul.f32 0.25, %v106_v33 }
  0xbe   :  { %655 = vset.pattern.permute.xlu1 %v735_v34  ;;  %v907_v36 = vpop.permute.xlu1 %179 }
  0xbf   :  { %v110_v37 = vsub.f32 %v673_v28, %v107_v35  ;;  %v108_v38 = vsub.f32 %v669_v23, %v107_v35  ;;  %v109_v40 = vsub.f32 %v671_v25, %v107_v35  ;;  %v111_v43 = vsub.f32 %v675_v32, %v107_v35  ;;  %443 = vperm.xlu1 %655, %v794_v20  }
  0xc1   :  { %v112_v44 = vmul.f32 %v108_v38, %v108_v38  ;;  %v113_v46 = vmul.f32 %v109_v40, %v109_v40  ;;  %v115_v29 = vmul.f32 %v110_v37, %v110_v37  ;;  %v117_v51 = vmul.f32 %v111_v43, %v111_v43 }
  0xc3   :  { %v114_v47 = vadd.f32 %v113_v46, %v112_v44  ;;  %656 = vset.pattern.permute.xlu1 %v740_v39  ;;  %v302_v48 = vpop.permute.xlu1 %301 }
  0xc4   :  { %208 = vperm.xlu1 %656, %v770_v2   ;;  %v304_v3 = vmul.f32 %v302_v48, %v296_v61 }
  0xc5   :  { %v116_v49 = vadd.f32 %v115_v29, %v114_v47 }
  0xc6   :  { %v310_v63 = vadd.f32 %v309_v1, %v304_v3 }
  0xc7   :  { %v118_v34 = vadd.f32 %v117_v51, %v116_v49 }
  0xc8   :  { %658 = vset.pattern.permute.xlu1 %v748_v53  ;;  %v319_v54 = vpop.permute.xlu1 %318 }
  0xc9   :  { %v119_v55 = vmul.f32 0.25, %v118_v34  ;;  %237 = vperm.xlu1 %658, %v770_v2  }
  0xcb   :  { %v120_v56 = vadd.f32 1e-05, %v119_v55 }
  0xcd   :  { %676 = vrsqrt.f32 %v120_v56  ;;  %501 = vperm.xlu1 %658, %v794_v20   ;;  %v324_v58 = vpop.permute.xlu1 %323 }
  0xce   :  { %v326_v4 = vmul.f32 %v324_v58, %v297_v60 }
  0xd1   :  { %660 = vset.pattern.permute.xlu1 %v743_v42  ;;  %v321_v42 = vmul.f32 %v319_v54, %v296_v61 }
  0xd2   :  { %v341_v39 = vpop.permute.xlu1 %340  ;;  %270 = vperm.xlu1 %660, %v770_v2  }
  0xd3   :  { %v343_v7 = vmul.f32 %v341_v39, %v297_v60  ;;  %v327_v17 = vadd.f32 %v326_v4, %v321_v42 }
  0xd5   :  { %v344_v23 = vadd.f32 %v343_v7, %v338_v5 }
  0xd6   :  { %661 = vset.pattern.permute.xlu1 %v742_v41  ;;  %v157_v41 = vpop.permute.xlu0 %156 }
  0xd7   :  { %v313_v0 = vpop.permute.xlu1 %312  ;;  %529 = vperm.xlu1 %661, %v794_v20  }
  0xda   :  { %v677_v8 = vpop.eup %676  ;;  %v943_v35 = vpop.permute.xlu0 %420 }
  0xdb   :  { %v920_v9 = vmul.f32 %v677_v8, %v111_v43  ;;  %v922_v10 = vmul.f32 %v677_v8, %v108_v38  ;;  %v924_v11 = vmul.f32 %v677_v8, %v109_v40  ;;  %v926_v12 = vmul.f32 %v677_v8, %v110_v37  ;;  %663 = vset.pattern.permute.xlu1 %v749_v13 }
  0xdc   :  { %v353_v18 = vpop.permute.xlu1 %352  ;;  %276 = vperm.xlu1 %663, %v770_v2   ;;  %v349_v37 = vadd.f32 %v347_v59, %v344_v23 }
  0xdd   :  { %v147_v6 = vmul.f32 %v892_v21, %v920_v9  ;;  %v130_v19 = vmul.f32 %v883_v14, %v922_v10  ;;  %v135_v22 = vmul.f32 %v889_v16, %v924_v11  ;;  %v164_v25 = vmul.f32 %v899_v27, %v924_v11 }
  0xde   :  { %v170_v26 = vmul.f32 %v903_v31, %v926_v12  ;;  %v159_v28 = vmul.f32 %v157_v41, %v922_v10  ;;  %v141_v32 = vmul.f32 %v867_v52, %v926_v12  ;;  %v315_v21 = vadd.f32 %v313_v0, %v310_v63  ;;  %v952_v48 = vpop.permute.xlu0 %431 }
  0xdf   :  { %v136_v30 = vadd.f32 %v135_v22, %v130_v19  ;;  %v332_v16 = vadd.f32 %v887_v15, %v327_v17  ;;  %v176_v31 = vmul.f32 %v870_v57, %v920_v9  ;;  %v355_v40 = vmul.f32 %v353_v18, %v296_v61 }
  0xe0   :  { %v165_v33 = vadd.f32 %v164_v25, %v159_v28  ;;  %540 = vperm.xlu1 %663, %v794_v20   ;;  %678 = vtanh.f32 %v315_v21 }
  0xe1   :  { %v142_v14 = vadd.f32 %v141_v32, %v136_v30  ;;  %v358_v27 = vpop.permute.xlu1 %357  ;;  %680 = vtanh.f32 %v332_v16 }
  0xe2   :  { %v171_v38 = vadd.f32 %v170_v26, %v165_v33  ;;  %v360_v43 = vmul.f32 %v358_v27, %v297_v60  ;;  %682 = vtanh.f32 %v349_v37 }
  0xe3   :  { %v148_v44 = vadd.f32 %v147_v6, %v142_v14 }
  0xe4   :  { %v177_v52 = vadd.f32 %v176_v31, %v171_v38  ;;  %v361_v46 = vadd.f32 %v360_v43, %v355_v40  ;;  %665 = vset.pattern.permute.xlu1 %v744_v45 }
  0xe5   :  { %v153_v29 = vadd.f32 %v895_v24, %v148_v44  ;;  %546 = vperm.xlu1 %665, %v794_v20   ;;  %v193_v24 = vmul.f32 %v191_v62, %v924_v11  ;;  %v197_v20 = vpop.permute.xlu0 %196 }
  0xe6   :  { %v182_v15 = vadd.f32 %v907_v36, %v177_v52  ;;  %v364_v47 = vpop.permute.xlu1 %363  ;;  %v199_v36 = vmul.f32 %v197_v20, %v926_v12 }
  0xe7   :  { %684 = vtanh.f32 %v153_v29  ;;  %v366_v57 = vadd.f32 %v364_v47, %v361_v46 }
  0xe8   :  { %686 = vtanh.f32 %v182_v15 }
  0xe9   :  { %688 = vtanh.f32 %v366_v57  ;;  %666 = vset.pattern.permute.xlu1 %v745_v50  ;;  %v409_v8 = vpop.permute.xlu0 %408 }
  0xea   :  { %288 = vperm.xlu1 %666, %v770_v2  }
  0xeb   :  { %v186_v45 = vpop.permute.xlu1 %185 }
  0xec   :  { %v188_v49 = vmul.f32 %v186_v45, %v922_v10 }
  0xed   :  { %v679_v34 = vpop.eup %678  ;;  %v479_v18 = vpop.permute.xlu0 %478 }
  0xee   :  { %v194_v51 = vadd.f32 %v193_v24, %v188_v49  ;;  %v681_v55 = vpop.eup %680 }
  0xef   :  { %v683_v56 = vpop.eup %682  ;;  %v368_v58 = vadd.f32 %v681_v55, %v679_v34 }
  0xf0   :  { %v392_v53 = vpop.permute.xlu1 %391  ;;  %v200_v54 = vadd.f32 %v199_v36, %v194_v51 }
  0xf1   :  { %v369_v61 = vadd.f32 %v683_v56, %v368_v58  ;;  %v226_v26 = vpop.permute.xlu0 %225 }
  0xf2   :  { %v228_v14 = vmul.f32 %v226_v26, %v926_v12 }
  0xf4   :  { %v959_v59 = vpop.eup %684 }
  0xf5   :  { %v961_v50 = vpop.eup %686  ;;  %v397_v2 = vpop.permute.xlu1 %396 }
  0xf6   :  { %v689_v39 = vpop.eup %688  ;;  %v965_v60 = vadd.f32 %v961_v50, %v959_v59  ;;  %v232_v37 = vpop.permute.xlu0 %231 }
  0xf7   :  { %v370_v62 = vadd.f32 %v689_v39, %v369_v61  ;;  %v234_v40 = vmul.f32 %v232_v37, %v920_v9 }
  0xf9   :  { %v371_v1 = vmul.f32 0.25, %v370_v62 }
  0xfa   :  { %v426_v0 = vpop.permute.xlu1 %425 }
  0xfb   :  { %v372_v4 = vsub.f32 %v679_v34, %v371_v1  ;;  %v373_v5 = vsub.f32 %v681_v55, %v371_v1  ;;  %v374_v13 = vsub.f32 %v683_v56, %v371_v1  ;;  %v375_v6 = vsub.f32 %v689_v39, %v371_v1 }
  0xfd   :  { %v376_v42 = vmul.f32 %v372_v4, %v372_v4  ;;  %v377_v41 = vmul.f32 %v373_v5, %v373_v5  ;;  %v379_v19 = vmul.f32 %v374_v13, %v374_v13  ;;  %v381_v25 = vmul.f32 %v375_v6, %v375_v6 }
  0xff   :  { %v403_v3 = vpop.permute.xlu1 %402  ;;  %v378_v17 = vadd.f32 %v377_v41, %v376_v42  ;;  %v496_v41 = vpop.permute.xlu0 %495 }
 0x101   :  { %v380_v22 = vadd.f32 %v379_v19, %v378_v17 }
 0x103   :  { %v382_v28 = vadd.f32 %v381_v25, %v380_v22  ;;  %v473_v25 = vpop.permute.xlu0 %472 }
 0x104   :  { %v450_v7 = vpop.permute.xlu1 %449 }
 0x105   :  { %v383_v33 = vmul.f32 0.25, %v382_v28 }
 0x107   :  { %v384_v31 = vadd.f32 1e-05, %v383_v33 }
 0x109   :  { %v455_v63 = vpop.permute.xlu1 %454  ;;  %690 = vrsqrt.f32 %v384_v31 }
 0x10e   :  { %v215_v23 = vpop.permute.xlu1 %214 }
 0x10f   :  { %v217_v32 = vmul.f32 %v215_v23, %v922_v10 }
 0x113   :  { %v220_v30 = vpop.permute.xlu1 %219 }
 0x114   :  { %v222_v21 = vmul.f32 %v220_v30, %v924_v11 }
 0x116   :  { %v223_v16 = vadd.f32 %v222_v21, %v217_v32  ;;  %v691_v10 = vpop.eup %690 }
 0x117   :  { %v386_v47 = vmul.f32 %v691_v10, %v372_v4  ;;  %v387_v57 = vmul.f32 %v691_v10, %v373_v5  ;;  %v388_v36 = vmul.f32 %v691_v10, %v374_v13  ;;  %v389_v56 = vmul.f32 %v691_v10, %v375_v6 }
 0x118   :  { %v438_v27 = vpop.permute.xlu1 %437  ;;  %v229_v38 = vadd.f32 %v228_v14, %v223_v16 }
 0x119   :  { %v423_v45 = vmul.f32 %v943_v35, %v386_v47  ;;  %v428_v24 = vmul.f32 %v426_v0, %v387_v57  ;;  %v394_v49 = vmul.f32 %v392_v53, %v386_v47  ;;  %v399_v20 = vmul.f32 %v397_v2, %v387_v57 }
 0x11a   :  { %v235_v43 = vadd.f32 %v234_v40, %v229_v38  ;;  %v434_v58 = vmul.f32 %v952_v48, %v388_v36  ;;  %v452_v39 = vmul.f32 %v450_v7, %v386_v47  ;;  %v405_v61 = vmul.f32 %v403_v3, %v388_v36 }
 0x11b   :  { %v429_v51 = vadd.f32 %v428_v24, %v423_v45  ;;  %v400_v55 = vadd.f32 %v399_v20, %v394_v49  ;;  %v440_v4 = vmul.f32 %v438_v27, %v389_v56  ;;  %v411_v53 = vmul.f32 %v409_v8, %v389_v56 }
 0x11c   :  { %v481_v13 = vmul.f32 %v479_v18, %v386_v47  ;;  %v498_v30 = vmul.f32 %v496_v41, %v389_v56 }
 0x11d   :  { %v461_v44 = vpop.permute.xlu1 %460  ;;  %v406_v1 = vadd.f32 %v405_v61, %v400_v55 }
 0x11e   :  { %v463_v5 = vmul.f32 %v461_v44, %v388_v36 }
 0x11f   :  { %v412_v6 = vadd.f32 %v411_v53, %v406_v1 }
 0x122   :  { %v484_v52 = vpop.permute.xlu1 %483 }
 0x123   :  { %v486_v35 = vmul.f32 %v484_v52, %v387_v57 }
 0x127   :  { %v203_v46 = vpop.permute.xlu1 %202 }
 0x128   :  { %v205_v29 = vmul.f32 %v203_v46, %v920_v9  ;;  %v457_v9 = vmul.f32 %v455_v63, %v387_v57  ;;  %v487_v63 = vadd.f32 %v486_v35, %v481_v13 }
 0x12a   :  { %v206_v15 = vadd.f32 %v205_v29, %v200_v54  ;;  %v435_v54 = vadd.f32 %v434_v58, %v429_v51  ;;  %v458_v42 = vadd.f32 %v457_v9, %v452_v39 }
 0x12b   :  { %v467_v11 = vpop.permute.xlu1 %466 }
 0x12c   :  { %v469_v0 = vmul.f32 %v467_v11, %v389_v56  ;;  %v441_v2 = vadd.f32 %v440_v4, %v435_v54  ;;  %v464_v17 = vadd.f32 %v463_v5, %v458_v42 }
 0x12e   :  { %v470_v3 = vadd.f32 %v469_v0, %v464_v17  ;;  %v266_v0 = vpop.permute.xlu0 %265 }
 0x130   :  { %v490_v12 = vpop.permute.xlu1 %489  ;;  %v475_v32 = vadd.f32 %v473_v25, %v470_v3 }
 0x131   :  { %v492_v19 = vmul.f32 %v490_v12, %v388_v36 }
 0x133   :  { %v493_v26 = vadd.f32 %v492_v19, %v487_v63 }
 0x135   :  { %v415_v34 = vpop.permute.xlu1 %414  ;;  %v499_v18 = vadd.f32 %v498_v30, %v493_v26 }
 0x136   :  { %v417_v23 = vadd.f32 %v415_v34, %v412_v6 }
 0x13a   :  { %v444_v62 = vpop.permute.xlu1 %443 }
 0x13b   :  { %v446_v22 = vadd.f32 %v444_v62, %v441_v2  ;;  %v535_v2 = vpop.permute.xlu0 %534 }
 0x13f   :  { %v209_v48 = vpop.permute.xlu1 %208 }
 0x140   :  { %v211_v7 = vadd.f32 %v209_v48, %v206_v15 }
 0x142   :  { %692 = vtanh.f32 %v211_v7 }
 0x143   :  { %694 = vtanh.f32 %v446_v22 }
 0x144   :  { %v238_v28 = vpop.permute.xlu1 %237  ;;  %696 = vtanh.f32 %v417_v23 }
 0x145   :  { %v240_v8 = vadd.f32 %v238_v28, %v235_v43  ;;  %v283_v28 = vpop.permute.xlu0 %282 }
 0x147   :  { %698 = vtanh.f32 %v240_v8 }
 0x148   :  { %v502_v21 = vpop.permute.xlu1 %501  ;;  %700 = vtanh.f32 %v475_v32 }
 0x149   :  { %v504_v33 = vadd.f32 %v502_v21, %v499_v18 }
 0x14b   :  { %702 = vtanh.f32 %v504_v33 }
 0x14d   :  { %v271_v39 = vpop.permute.xlu1 %270 }
 0x14f   :  { %v693_v14 = vpop.eup %692 }
 0x150   :  { %v695_v16 = vpop.eup %694  ;;  %v243_v37 = vadd.f32 %v693_v14, %v965_v60 }
 0x151   :  { %v697_v27 = vpop.eup %696 }
 0x152   :  { %v506_v38 = vadd.f32 %v697_v27, %v695_v16  ;;  %v530_v5 = vpop.permute.xlu1 %529 }
 0x154   :  { %v699_v31 = vpop.eup %698 }
 0x155   :  { %v244_v40 = vadd.f32 %v699_v31, %v243_v37  ;;  %v701_v44 = vpop.eup %700 }
 0x156   :  { %v507_v46 = vadd.f32 %v701_v44, %v506_v38 }
 0x157   :  { %v245_v52 = vmul.f32 0.25, %v244_v40  ;;  %v277_v53 = vpop.permute.xlu1 %276 }
 0x158   :  { %v703_v29 = vpop.eup %702 }
 0x159   :  { %v248_v10 = vsub.f32 %v693_v14, %v245_v52  ;;  %v249_v43 = vsub.f32 %v699_v31, %v245_v52  ;;  %v508_v15 = vadd.f32 %v703_v29, %v507_v46  ;;  %v246_v11 = vsub.f32 %v959_v59, %v245_v52 }
 0x15a   :  { %v247_v47 = vsub.f32 %v961_v50, %v245_v52  ;;  %v553_v52 = vpop.permute.xlu0 %552 }
 0x15b   :  { %v509_v57 = vmul.f32 0.25, %v508_v15  ;;  %v250_v12 = vmul.f32 %v246_v11, %v246_v11  ;;  %v253_v36 = vmul.f32 %v248_v10, %v248_v10  ;;  %v255_v58 = vmul.f32 %v249_v43, %v249_v43  ;;  %v541_v41 = vpop.permute.xlu1 %540 }
 0x15c   :  { %v251_v45 = vmul.f32 %v247_v47, %v247_v47 }
 0x15d   :  { %v511_v24 = vsub.f32 %v695_v16, %v509_v57  ;;  %v512_v60 = vsub.f32 %v701_v44, %v509_v57  ;;  %v510_v49 = vsub.f32 %v697_v27, %v509_v57  ;;  %v513_v51 = vsub.f32 %v703_v29, %v509_v57 }
 0x15e   :  { %v252_v20 = vadd.f32 %v251_v45, %v250_v12 }
 0x15f   :  { %v514_v34 = vmul.f32 %v510_v49, %v510_v49  ;;  %v515_v55 = vmul.f32 %v511_v24, %v511_v24  ;;  %v517_v61 = vmul.f32 %v512_v60, %v512_v60  ;;  %v519_v62 = vmul.f32 %v513_v51, %v513_v51 }
 0x160   :  { %v254_v56 = vadd.f32 %v253_v36, %v252_v20  ;;  %v547_v48 = vpop.permute.xlu1 %546 }
 0x161   :  { %v516_v9 = vadd.f32 %v515_v55, %v514_v34 }
 0x162   :  { %v256_v54 = vadd.f32 %v255_v58, %v254_v56 }
 0x163   :  { %v518_v59 = vadd.f32 %v517_v61, %v516_v9 }
 0x164   :  { %v257_v50 = vmul.f32 0.25, %v256_v54 }
 0x165   :  { %v520_v1 = vadd.f32 %v519_v62, %v518_v59  ;;  %v289_v27 = vpop.permute.xlu1 %288 }
 0x166   :  { %v258_v4 = vadd.f32 1e-05, %v257_v50 }
 0x167   :  { %v521_v42 = vmul.f32 0.25, %v520_v1 }
 0x168   :  { %704 = vrsqrt.f32 %v258_v4 }
 0x169   :  { %v522_v35 = vadd.f32 1e-05, %v521_v42 }
 0x16b   :  { %706 = vrsqrt.f32 %v522_v35 }
 0x175   :  { %v705_v13 = vpop.eup %704 }
 0x176   :  { %v261_v17 = vmul.f32 %v705_v13, %v247_v47  ;;  %v260_v19 = vmul.f32 %v705_v13, %v246_v11  ;;  %v262_v6 = vmul.f32 %v705_v13, %v248_v10  ;;  %v263_v22 = vmul.f32 %v705_v13, %v249_v43 }
 0x178   :  { %v707_v7 = vpop.eup %706  ;;  %v273_v63 = vmul.f32 %v271_v39, %v261_v17  ;;  %v268_v3 = vmul.f32 %v266_v0, %v260_v19  ;;  %v279_v32 = vmul.f32 %v277_v53, %v262_v6  ;;  %v285_v14 = vmul.f32 %v283_v28, %v263_v22 }
 0x179   :  { %v524_v23 = vmul.f32 %v707_v7, %v510_v49  ;;  %v525_v25 = vmul.f32 %v707_v7, %v511_v24  ;;  %v526_v26 = vmul.f32 %v707_v7, %v512_v60  ;;  %v527_v21 = vmul.f32 %v707_v7, %v513_v51 }
 0x17a   :  { %v274_v30 = vadd.f32 %v273_v63, %v268_v3 }
 0x17b   :  { %v532_v8 = vmul.f32 %v530_v5, %v524_v23  ;;  %v537_v18 = vmul.f32 %v535_v2, %v525_v25  ;;  %v543_v37 = vmul.f32 %v541_v41, %v526_v26  ;;  %v549_v40 = vmul.f32 %v547_v48, %v527_v21 }
 0x17c   :  { %v280_v33 = vadd.f32 %v279_v32, %v274_v30 }
 0x17d   :  { %v538_v16 = vadd.f32 %v537_v18, %v532_v8 }
 0x17e   :  { %v286_v38 = vadd.f32 %v285_v14, %v280_v33 }
 0x17f   :  { %v544_v31 = vadd.f32 %v543_v37, %v538_v16 }
 0x180   :  { %v291_v44 = vadd.f32 %v289_v27, %v286_v38 }
 0x181   :  { %v550_v46 = vadd.f32 %v549_v40, %v544_v31 }
 0x182   :  { %708 = vtanh.f32 %v291_v44 }
 0x183   :  { %v555_v29 = vadd.f32 %v553_v52, %v550_v46 }
 0x185   :  { %710 = vtanh.f32 %v555_v29 }
 0x18f   :  { %v709_v10 = vpop.eup %708 }
 0x190   :  { %v293_v43 = vmul.f32 0.5, %v709_v10 }
 0x192   :  { %v711_v15 = vpop.eup %710  ;;  %v294_v11 = vadd.f32 0.5, %v293_v43 }
 0x193   :  { %v557_v47 = vmul.f32 0.5, %v711_v15 }
 0x194   :  { %295 = vst [vmem:[%s985_s2] sm:$0xff] %v294_v11 }
 0x195   :  { %v558_v57 = vadd.f32 0.5, %v557_v47 }
 0x197   :  { %559 = vst [vmem:[%s985_s2 + $0x8] sm:$0xff] %v558_v57 }

</bundles_post_ra>
